<compile_context>
chip_gen: v7x
topology: tpu7x:2x2x1
jax: 0.10.0
libtpu: 0.0.40
codegen_flags: <defaults>
</compile_context>

<pallas_src>
import functools

import jax
import jax.numpy as jnp
from jax import lax
from jax.experimental import pallas as pl
from jax.experimental.pallas import tpu as pltpu

FEAT = 768 * 2     # 1536
HIDDEN = 320
OUT = 1


def _round_up(a, b):
    return (a + b - 1) // b * b


def loss_binary_kernel(x_ref, w1_ref, b1_ref, w2_ref, b2_ref, tgt_ref, out_ref,
                       *, n_rows, tile_m):
    # Row ids of this tile; rows >= n_rows belong to the ragged tail of the last tile
    # (their x / target contents are undefined) and are masked out below.
    row = pl.program_id(0) * tile_m + lax.broadcasted_iota(jnp.int32, (tile_m, 1), 0)
    valid = row < n_rows

    # --- first Linear + ReLU on the MXU: cast the f32 x tile to bf16 in-kernel
    #     (VPU work, hidden under the matmul), accumulate in f32 ---
    x_bf = x_ref[...].astype(jnp.bfloat16)
    h = jnp.dot(x_bf, w1_ref[...], preferred_element_type=jnp.float32)
    h = jnp.maximum(h + b1_ref[...], 0.0)                              # (tile_m, HIDDEN) f32

    # --- second Linear (320 -> 1) as VPU multiply + lane reduction (avoids a
    #     1-of-256-lanes MXU pass); w2_ref is the (1, HIDDEN) weight row ---
    z = jnp.sum(h * w2_ref[...], axis=-1, keepdims=True) + b2_ref[...]  # (tile_m, 1) logits

    # Zero logits / targets of masked rows so any garbage (NaN/Inf) in the OOB tail
    # cannot poison the reduction.
    z = jnp.where(valid, z, 0.0)
    t = jnp.where(valid, tgt_ref[...], 0.0)

    # --- weighted BCE from logits (numerically stable identity; matches the
    #     Sigmoid -> BCELoss path for non-saturated logits) ---
    bce = jnp.maximum(z, 0.0) - z * t + jnp.log1p(jnp.exp(-jnp.abs(z)))
    wgt = jnp.where(t > 0.0, 1.0, 0.25)       # BCE weight computed in-kernel
    wgt = jnp.where(valid, wgt, 0.0)          # ragged-tail mask
    partial = jnp.sum(bce * wgt)

    # Lane-dense per-tile partial: broadcast the scalar over the (1, 8, 128) block
    # (plain unmasked vector stores); the wrapper reads element [:, 0, 0] of each tile.
    out_ref[...] = jnp.full(out_ref.shape, partial, dtype=out_ref.dtype)


def loss_binary_forward(x, w1, b1, w2, b2, event_spans_index, *, tm=1024):
    """Scalar weighted-BCE loss (predict=False branch of LossBinary.forward)."""
    n = x.shape[0]

    # Glue (plain JAX): dense 0/1 target from the index list (scatter).
    target = jnp.zeros((n,), dtype=jnp.float32)
    if event_spans_index.shape[0] != 0:
        target = target.at[event_spans_index].set(1.0)
    target = target.reshape(n, 1)

    # Parameter prep (tiny, one-off): bf16 MXU copy of w1, row-shaped b1 / w2 / b2.
    w1_bf16 = jnp.asarray(w1).astype(jnp.bfloat16)
    b1_row = jnp.asarray(b1, jnp.float32).reshape(1, HIDDEN)
    w2_row = jnp.asarray(w2, jnp.float32).reshape(1, HIDDEN)
    b2_row = jnp.asarray(b2, jnp.float32).reshape(1, OUT)

    # Generation-aware VMEM cap: ~40 MiB on 64-MiB-per-TC v7x, ~96 MiB on 128-MiB v5e/v6e.
    try:
        vmem_cap = int(getattr(pltpu.get_tpu_info(), "vmem_capacity_bytes", 64 << 20))
    except Exception:   # interpret mode / unexpected backends
        vmem_cap = 64 << 20
    vmem_cap_limit = (40 << 20) if vmem_cap <= (64 << 20) else (96 << 20)

    def vmem_needed(tile_m):
        return (2 * tile_m * FEAT * 4        # double-buffered f32 x tiles
                + tile_m * FEAT * 2          # in-kernel bf16 copy of the x tile
                + 2 * FEAT * HIDDEN * 2      # resident w1 (bf16) + pipeline buffer
                + 3 * tile_m * HIDDEN * 4    # f32 h + elementwise intermediates
                + 2 * tile_m * 4             # target tiles
                + (2 << 20))                 # bias rows, output block, margin

    # Row-tile size: multiple of 8 (sublane), no larger than the batch needs, shrunk
    # if the estimated working set would exceed the generation cap.
    tm = max(8, (min(tm, n) // 8) * 8)
    while tm > 8 and vmem_needed(tm) > vmem_cap_limit:
        tm = max(8, _round_up(tm // 2, 8))
    vmem_limit = int(min(max(vmem_needed(tm), 16 << 20), vmem_cap_limit))

    num_tiles = pl.cdiv(n, tm)

    cost = pl.CostEstimate(
        flops=2 * n * FEAT * HIDDEN + 4 * n * HIDDEN,
        transcendentals=2 * n,
        bytes_accessed=(n * FEAT * 4               # x (f32, single pass)
                        + FEAT * HIDDEN * 2        # w1 (bf16)
                        + n * 4                    # target
                        + num_tiles * 8 * 128 * 4  # per-tile partials
                        + 2 * HIDDEN * 4 + 8),     # b1, w2 row, b2
    )

    # NOTE: the resident w1/b1/w2/b2 keep Pallas' default double-buffering (~1 MiB of
    # unused second buffer for w1); with tm<=1024 the budget above has ample headroom,
    # so pl.Buffered(1) single-buffering is intentionally not relied on.
    partials = pl.pallas_call(
        functools.partial(loss_binary_kernel, n_rows=n, tile_m=tm),
        out_shape=jax.ShapeDtypeStruct((num_tiles, 8, 128), jnp.float32),
        grid=(num_tiles,),
        in_specs=[
            pl.BlockSpec((tm, FEAT), lambda i: (i, 0)),        # x tile (native f32)
            pl.BlockSpec((FEAT, HIDDEN), lambda i: (0, 0)),    # w1 (resident, bf16)
            pl.BlockSpec((1, HIDDEN), lambda i: (0, 0)),       # b1 (resident)
            pl.BlockSpec((1, HIDDEN), lambda i: (0, 0)),       # w2 row (resident)
            pl.BlockSpec((1, OUT), lambda i: (0, 0)),          # b2 (resident)
            pl.BlockSpec((tm, 1), lambda i: (i, 0)),           # target tile
        ],
        out_specs=pl.BlockSpec((1, 8, 128), lambda i: (i, 0, 0)),   # per-tile partial
        compiler_params=pltpu.CompilerParams(
            # Independent per-tile partials: "parallel" lets v7x split the row axis
            # across both TensorCores (harmless no-op on single-TC v5e/v6e).
            dimension_semantics=("parallel",),
            vmem_limit_bytes=vmem_limit,
        ),
        cost_estimate=cost,
    )(x, w1_bf16, b1_row, w2_row, b2_row, target)

    # Tiny final reduction over per-tile partials (element [0, 0] of each block).
    return jnp.sum(partials[:, 0, 0])


def init_params(key, std=0.02):
    k1, k2 = jax.random.split(key)
    w1 = std * jax.random.normal(k1, (FEAT, HIDDEN), dtype=jnp.float32)   # Linear(1536,320).weight.T
    b1 = jnp.zeros((HIDDEN,), dtype=jnp.float32)
    w2 = std * jax.random.normal(k2, (HIDDEN, OUT), dtype=jnp.float32)    # Linear(320,1).weight.T
    b2 = jnp.zeros((OUT,), dtype=jnp.float32)
    return w1, b1, w2, b2


if __name__ == "__main__":
    key = jax.random.PRNGKey(0)
    k_x, k_p = jax.random.split(key)

    N = 20                                                      # small batch of candidate spans
    x = jax.random.normal(k_x, (N, FEAT), dtype=jnp.float32)
    event_spans_index = jnp.array([1, 5, 13], dtype=jnp.int32)  # positives

    w1, b1, w2, b2 = init_params(k_p)

    # Pure-JAX reference with matching numerics (bf16 MXU operands, logits-form BCE).
    t_ref = jnp.zeros((N,), jnp.float32).at[event_spans_index].set(1.0)
    h_ref = jnp.maximum(
        jnp.dot(x.astype(jnp.bfloat16), w1.astype(jnp.bfloat16),
                preferred_element_type=jnp.float32) + b1, 0.0)
    z_ref = (h_ref @ w2 + b2)[:, 0]
    bce_ref = jnp.maximum(z_ref, 0.0) - z_ref * t_ref + jnp.log1p(jnp.exp(-jnp.abs(z_ref)))
    loss_ref = jnp.sum(bce_ref * jnp.where(t_ref > 0, 1.0, 0.25))

    # tm=8 exercises the multi-tile "parallel" partial-sum path and the ragged
    # last-tile masking (N=20 -> row tiles [0,8), [8,16), [16,24)).
    loss_small_tile = loss_binary_forward(x, w1, b1, w2, b2, event_spans_index, tm=8)
    # Default tm (production path): single ragged tile covering all rows.
    loss_default = loss_binary_forward(x, w1, b1, w2, b2, event_spans_index)
    jax.block_until_ready((loss_small_tile, loss_default))

    assert jnp.allclose(loss_small_tile, loss_ref, rtol=1e-3, atol=1e-3), (loss_small_tile, loss_ref)
    assert jnp.allclose(loss_default, loss_ref, rtol=1e-3, atol=1e-3), (loss_default, loss_ref)

    print("KERNEL_OK")
</pallas_src>

<mosaic_0001>
module attributes {stable_mosaic.version = 11 : i64} {
  func.func @loss_binary_kernel(%arg0: i32, %arg1: memref<8x1536xf32, #tpu.memory_space<vmem>>, %arg2: memref<1536x320xbf16, #tpu.memory_space<vmem>>, %arg3: memref<1x320xf32, #tpu.memory_space<vmem>>, %arg4: memref<1x320xf32, #tpu.memory_space<vmem>>, %arg5: memref<1x1xf32, #tpu.memory_space<vmem>>, %arg6: memref<8x1xf32, #tpu.memory_space<vmem>>, %arg7: memref<1x8x128xf32, #tpu.memory_space<vmem>>) attributes {dimension_semantics = [#tpu.dimension_semantics<parallel>], iteration_bounds = array<i64: 3>, scalar_prefetch = 0 : i64, scratch_operands = 0 : i64, tpu.core_type = #tpu.core_type<tc>, window_params = [{transform_indices = @transform_0, window_bounds = array<i64: 8, 1536>}, {pipeline_mode = #tpu.pipeline_mode<synchronous>, transform_indices = @transform_1, window_bounds = array<i64: 1536, 320>}, {pipeline_mode = #tpu.pipeline_mode<synchronous>, transform_indices = @transform_2, window_bounds = array<i64: 1, 320>}, {pipeline_mode = #tpu.pipeline_mode<synchronous>, transform_indices = @transform_3, window_bounds = array<i64: 1, 320>}, {pipeline_mode = #tpu.pipeline_mode<synchronous>, transform_indices = @transform_4, window_bounds = array<i64: 1, 1>}, {transform_indices = @transform_5, window_bounds = array<i64: 8, 1>}, {transform_indices = @transform_6, window_bounds = array<i64: 1, 8, 128>}]} {
    %c8_i32 = arith.constant 8 : i32
    %0 = arith.muli %arg0, %c8_i32 : i32
    %1 = tpu.iota {dimensions = array<i32: 0>} : vector<8x1xi32>
    %2 = vector.broadcast %0 : i32 to vector<8x1xi32>
    %3 = arith.addi %2, %1 : vector<8x1xi32>
    %c20_i32 = arith.constant 20 : i32
    %4 = vector.broadcast %c20_i32 : i32 to vector<8x1xi32>
    %5 = arith.cmpi slt, %3, %4 : vector<8x1xi32>
    %c0 = arith.constant 0 : index
    %c0_0 = arith.constant 0 : index
    %6 = vector.load %arg1[%c0, %c0_0] : memref<8x1536xf32, #tpu.memory_space<vmem>>, vector<8x1536xf32>
    %7 = arith.truncf %6 : vector<8x1536xf32> to vector<8x1536xbf16>
    %c0_1 = arith.constant 0 : index
    %c0_2 = arith.constant 0 : index
    %8 = vector.load %arg2[%c0_1, %c0_2] : memref<1536x320xbf16, #tpu.memory_space<vmem>>, vector<1536x320xbf16>
    %cst = arith.constant dense<0.000000e+00> : vector<8x320xf32>
    %9 = tpu.matmul %7, %8, %cst {dimension_numbers = #tpu.dot_dimension_numbers<[1], [0], [0], [1], [0, 0, 1, 1], [], []>} : vector<8x1536xbf16>, vector<1536x320xbf16>, vector<8x320xf32> -> vector<8x320xf32>
    %c0_3 = arith.constant 0 : index
    %c0_4 = arith.constant 0 : index
    %10 = vector.load %arg3[%c0_3, %c0_4] : memref<1x320xf32, #tpu.memory_space<vmem>>, vector<1x320xf32>
    %11 = vector.broadcast %10 : vector<1x320xf32> to vector<8x320xf32>
    %12 = arith.addf %9, %11 : vector<8x320xf32>
    %cst_5 = arith.constant 0.000000e+00 : f32
    %13 = vector.broadcast %cst_5 : f32 to vector<8x320xf32>
    %14 = arith.maximumf %12, %13 : vector<8x320xf32>
    %c0_6 = arith.constant 0 : index
    %c0_7 = arith.constant 0 : index
    %15 = vector.load %arg4[%c0_6, %c0_7] : memref<1x320xf32, #tpu.memory_space<vmem>>, vector<1x320xf32>
    %16 = vector.broadcast %15 : vector<1x320xf32> to vector<8x320xf32>
    %17 = arith.mulf %14, %16 : vector<8x320xf32>
    %cst_8 = arith.constant dense<0.000000e+00> : vector<8xf32>
    %18 = vector.multi_reduction <add>, %17, %cst_8 [1] : vector<8x320xf32> to vector<8xf32>
    %19 = vector.shape_cast %18 : vector<8xf32> to vector<8x1xf32>
    %c0_9 = arith.constant 0 : index
    %c0_10 = arith.constant 0 : index
    %20 = vector.load %arg5[%c0_9, %c0_10] : memref<1x1xf32, #tpu.memory_space<vmem>>, vector<1x1xf32>
    %21 = vector.broadcast %20 : vector<1x1xf32> to vector<8x1xf32>
    %22 = arith.addf %19, %21 : vector<8x1xf32>
    %cst_11 = arith.constant 0.000000e+00 : f32
    %23 = vector.broadcast %cst_11 : f32 to vector<8x1xf32>
    %24 = arith.select %5, %22, %23 : vector<8x1xi1>, vector<8x1xf32>
    %c0_12 = arith.constant 0 : index
    %c0_13 = arith.constant 0 : index
    %25 = vector.load %arg6[%c0_12, %c0_13] : memref<8x1xf32, #tpu.memory_space<vmem>>, vector<8x1xf32>
    %cst_14 = arith.constant 0.000000e+00 : f32
    %26 = vector.broadcast %cst_14 : f32 to vector<8x1xf32>
    %27 = arith.select %5, %25, %26 : vector<8x1xi1>, vector<8x1xf32>
    %cst_15 = arith.constant 0.000000e+00 : f32
    %28 = vector.broadcast %cst_15 : f32 to vector<8x1xf32>
    %29 = arith.maximumf %24, %28 : vector<8x1xf32>
    %30 = arith.mulf %24, %27 : vector<8x1xf32>
    %31 = arith.subf %29, %30 : vector<8x1xf32>
    %32 = math.absf %24 : vector<8x1xf32>
    %cst_16 = arith.constant 0.000000e+00 : f32
    %33 = vector.broadcast %cst_16 : f32 to vector<8x1xf32>
    %34 = arith.subf %33, %32 : vector<8x1xf32>
    %35 = math.exp %34 : vector<8x1xf32>
    %36 = math.log1p %35 : vector<8x1xf32>
    %37 = arith.addf %31, %36 : vector<8x1xf32>
    %cst_17 = arith.constant 0.000000e+00 : f32
    %38 = vector.broadcast %cst_17 : f32 to vector<8x1xf32>
    %39 = arith.cmpf ogt, %27, %38 : vector<8x1xf32>
    %cst_18 = arith.constant 1.000000e+00 : f32
    %cst_19 = arith.constant 2.500000e-01 : f32
    %40 = vector.broadcast %cst_18 : f32 to vector<8x1xf32>
    %41 = vector.broadcast %cst_19 : f32 to vector<8x1xf32>
    %42 = arith.select %39, %40, %41 : vector<8x1xi1>, vector<8x1xf32>
    %cst_20 = arith.constant 0.000000e+00 : f32
    %43 = vector.broadcast %cst_20 : f32 to vector<8x1xf32>
    %44 = arith.select %5, %42, %43 : vector<8x1xi1>, vector<8x1xf32>
    %45 = arith.mulf %37, %44 : vector<8x1xf32>
    %46 = vector.shape_cast %45 : vector<8x1xf32> to vector<1x8x1xf32>
    %cst_21 = arith.constant dense<0.000000e+00> : vector<1xf32>
    %47 = vector.multi_reduction <add>, %46, %cst_21 [1, 2] : vector<1x8x1xf32> to vector<1xf32>
    %48 = vector.shape_cast %47 : vector<1xf32> to vector<1x1x1xf32>
    %49 = vector.extract %48[0, 0, 0] : f32 from vector<1x1x1xf32>
    %50 = vector.broadcast %49 : f32 to vector<1x8x128xf32>
    %c0_22 = arith.constant 0 : index
    %c0_23 = arith.constant 0 : index
    %c0_24 = arith.constant 0 : index
    %51 = vector.load %arg7[%c0_22, %c0_23, %c0_24] : memref<1x8x128xf32, #tpu.memory_space<vmem>>, vector<1x8x128xf32>
    tpu.vector_store %arg7[%c0_22, %c0_23, %c0_24], %50 {strides = array<i32>} : memref<1x8x128xf32, #tpu.memory_space<vmem>>, vector<1x8x128xf32>,
    return
  }
  func.func @transform_0(%arg0: i32) -> (i32, i32) {
    %c0_i32 = arith.constant 0 : i32
    %c0_i32_0 = arith.constant 0 : i32
    return %arg0, %c0_i32 : i32, i32
  }
  func.func @transform_1(%arg0: i32) -> (i32, i32) {
    %c0_i32 = arith.constant 0 : i32
    %c0_i32_0 = arith.constant 0 : i32
    %c0_i32_1 = arith.constant 0 : i32
    return %c0_i32, %c0_i32_0 : i32, i32
  }
  func.func @transform_2(%arg0: i32) -> (i32, i32) {
    %c0_i32 = arith.constant 0 : i32
    %c0_i32_0 = arith.constant 0 : i32
    %c0_i32_1 = arith.constant 0 : i32
    return %c0_i32, %c0_i32_0 : i32, i32
  }
  func.func @transform_3(%arg0: i32) -> (i32, i32) {
    %c0_i32 = arith.constant 0 : i32
    %c0_i32_0 = arith.constant 0 : i32
    %c0_i32_1 = arith.constant 0 : i32
    return %c0_i32, %c0_i32_0 : i32, i32
  }
  func.func @transform_4(%arg0: i32) -> (i32, i32) {
    %c0_i32 = arith.constant 0 : i32
    %c0_i32_0 = arith.constant 0 : i32
    %c0_i32_1 = arith.constant 0 : i32
    return %c0_i32, %c0_i32_0 : i32, i32
  }
  func.func @transform_5(%arg0: i32) -> (i32, i32) {
    %c0_i32 = arith.constant 0 : i32
    %c0_i32_0 = arith.constant 0 : i32
    return %arg0, %c0_i32 : i32, i32
  }
  func.func @transform_6(%arg0: i32) -> (i32, i32, i32) {
    %c0_i32 = arith.constant 0 : i32
    %c0_i32_0 = arith.constant 0 : i32
    %c0_i32_1 = arith.constant 0 : i32
    return %arg0, %c0_i32, %c0_i32_0 : i32, i32, i32
  }
}

</mosaic_0001>

<bundles_post_ra>
// kernel: tpu_custom_call.1
= control target key start
LH: loop header
LB: loop body
LE: loop exit
PB: predicated region body
PF: predicated region fallthrough
CT: control target
= control target key end

     0   :  { %s4913_s0 = inlined_call_operand.vmem [shape: f32[20,1536], index: 0, kind: input, shape index: {}]   ;;  %s4914_s1 = inlined_call_operand.vmem [shape: bf16[1536,320], index: 1, kind: input, shape index: {}]   ;;  %s4915_s2 = inlined_call_operand.vmem [shape: f32[1,320], index: 2, kind: input, shape index: {}]   ;;  %s4916_s3 = inlined_call_operand.vmem [shape: f32[1,320], index: 3, kind: input, shape index: {}]   ;;  %s4917_s4 = inlined_call_operand.<no memory space> [shape: f32[1,1], index: 4, kind: input, shape index: {}]   ;;  %s4918_s5 = inlined_call_operand.vmem [shape: f32[20,1], index: 5, kind: input, shape index: {}]   ;;  %s4919_s6 = inlined_call_operand.hbm [shape: f32[3,8,128], index: 6, kind: output, shape index: {}]  }
   0x1   :  { %v11_v0 = vstv %s4917_s4 }
   0x2   :  { %12 = vst [vmem:[#allocation2] sm:$0x1] %v11_v0 }
   0x3   :  { %13 = vsyncpa [#allocation4], 0 }
   0x4   :  { %15 = vsyncpa [#allocation4 + $0x1], 0  ;;  %s3870_s23 = smov 0   ;;  %s3872_s24 = smov 0  }
   0x5   :  { %s3874_s25 = smov 0   ;;  %s3876_s26 = smov 0  }
   0x6 LB: > { %s3891_s4 = sadd.s32 4294967295, %s3828_s26   ;;  %s2882_s27 = sadd.s32 4294967294, %s3828_s26   ;;  %s3828_s26 = sphi %s3876_s26, %s4925_s26   ;;  %s3824_s25 = sphi %s3874_s25, %s4924_s25   ;;  %s3820_s24 = sphi %s3872_s24, %s4923_s24   ;;  %s3816_s23 = sphi %s3870_s23, %s4922_s23  }
   0x7   : > { %s3895_s28 = sadd.s32 1, %s3828_s26   ;;  %s164_s29 = sadd.s32 1, %s3824_s25 }
   0x8   : > { %s161_s30 = ssub.s32 %s3828_s26, %s3895_s28  ;;  %p174_p0 = scmp.ne.s32.totalorder %s3824_s25, %s3820_s24 }
   0x9   : > { %p162_p1 = scmp.eq.s32.totalorder %s161_s30, 0  ;;  %p175_p2 = scmp.eq.s32.totalorder %s3891_s4, 2 }
   0xa   : > { %p180_p3 = scmp.ne.s32.totalorder %s3820_s24, %s3816_s23  ;;  %p181_p4 = scmp.eq.s32.totalorder %s2882_s27, 2 }
   0xb   : > { %s3906_s7 = scalar_select %p162_p1, %s3824_s25, %s164_s29  }
   0xc   : > { %p3908_p5 = por %p175_p2, %p174_p0  ;;  %p3912_p6 = por %p181_p4, %p180_p3 }
   0xd   : > { %p2885_p7 = scmp.ge.s32.totalorder %s3828_s26, 1  ;;  %p226_p8 = scmp.lt.s32.totalorder %s3828_s26, 4 }
   0xf   : > { %p227_p9 = pnand %p2885_p7, %p226_p8 }
  0x10   : > { %v3378_v1 = vld [vmem:[%s4914_s1 + $0x4] ss:$12 sps:$4 sm:$0xff] (!%p227_p9)   ;;  %v3382_v3 = vld [vmem:[%s4914_s1] ss:$12 sps:$4 sm:$0xff] (!%p227_p9)   ;;  %v3384_v5 = vld [vmem:[%s4914_s1 + $0x1c] ss:$12 sps:$4 sm:$0xff] (!%p227_p9)  }
  0x11   : > { %230 = sbr.rel (%p227_p9) target bundleno = 963 (0x3c3), region = 44  ;;  %v3380_v2 = vld [vmem:[%s4914_s1 + $0x184] ss:$12 sps:$4 sm:$0xff] (!%p227_p9)   ;;  %2237 = vmatprep.subr.bf16.mxu1 (!%p227_p9), %v3378_v1  ;;  %v3383_v4 = vld [vmem:[%s4914_s1 + $0x180] ss:$12 sps:$4 sm:$0xff] (!%p227_p9)   ;;  %p260_p10 = scmp.lt.s32.totalorder (!%p227_p9), %s3891_s4, 2 }
  0x12   : > { %2278 = vmatprep.subr.bf16.mxu0 (!%p227_p9), %v3380_v2  ;;  %2238 = vmatpush1.bf16.msra.mxu1 (!%p227_p9), %v3382_v3  ;;  %v3386_v6 = vld [vmem:[%s4914_s1 + $0x19c] ss:$12 sps:$4 sm:$0xff] (!%p227_p9)   ;;  %v3388_v7 = vld [vmem:[%s4914_s1 + $0x18] ss:$12 sps:$4 sm:$0xff] (!%p227_p9)   ;;  %v3390_v9 = vld [vmem:[%s4914_s1 + $0x34] ss:$12 sps:$4 sm:$0xff] (!%p227_p9)  }
  0x13   : > { %2279 = vmatpush1.bf16.msra.mxu0 (!%p227_p9), %v3383_v4  ;;  %2239 = vmatprep.subr.bf16.mxu1 (!%p227_p9), %v3384_v5  ;;  %v3389_v8 = vld [vmem:[%s4914_s1 + $0x198] ss:$12 sps:$4 sm:$0xff] (!%p227_p9)   ;;  %v3392_v10 = vld [vmem:[%s4914_s1 + $0x1b4] ss:$12 sps:$4 sm:$0xff] (!%p227_p9)   ;;  %v3394_v11 = vld [vmem:[%s4914_s1 + $0x30] ss:$12 sps:$4 sm:$0xff] (!%p227_p9)  }
  0x14   : > { %2280 = vmatprep.subr.bf16.mxu0 (!%p227_p9), %v3386_v6  ;;  %v3395_v12 = vld [vmem:[%s4914_s1 + $0x1b0] ss:$12 sps:$4 sm:$0xff] (!%p227_p9)   ;;  %v3396_v13 = vld [vmem:[%s4914_s1 + $0x4c] ss:$12 sps:$4 sm:$0xff] (!%p227_p9)   ;;  %v3400_v15 = vld [vmem:[%s4914_s1 + $0x48] ss:$12 sps:$4 sm:$0xff] (!%p227_p9)  }
  0x15   : > { %v3398_v14 = vld [vmem:[%s4914_s1 + $0x1cc] ss:$12 sps:$4 sm:$0xff] (!%p227_p9)   ;;  %v3401_v16 = vld [vmem:[%s4914_s1 + $0x1c8] ss:$12 sps:$4 sm:$0xff] (!%p227_p9)   ;;  %v3402_v17 = vld [vmem:[%s4914_s1 + $0x64] ss:$12 sps:$4 sm:$0xff] (!%p227_p9)  }
  0x16   : > { %2240 = vmatpush1.bf16.msra.mxu1 (!%p227_p9), %v3388_v7  ;;  %v3404_v18 = vld [vmem:[%s4914_s1 + $0x1e4] ss:$12 sps:$4 sm:$0xff] (!%p227_p9)   ;;  %v3406_v19 = vld [vmem:[%s4914_s1 + $0x60] ss:$12 sps:$4 sm:$0xff] (!%p227_p9)   ;;  %v3408_v21 = vld [vmem:[%s4914_s1 + $0x7c] ss:$12 sps:$4 sm:$0xff] (!%p227_p9)  }
  0x17   : > { %2281 = vmatpush1.bf16.msra.mxu0 (!%p227_p9), %v3389_v8  ;;  %2241 = vmatprep.subr.bf16.mxu1 (!%p227_p9), %v3390_v9  ;;  %v3407_v20 = vld [vmem:[%s4914_s1 + $0x1e0] ss:$12 sps:$4 sm:$0xff] (!%p227_p9)   ;;  %v3410_v22 = vld [vmem:[%s4914_s1 + $0x1fc] ss:$12 sps:$4 sm:$0xff] (!%p227_p9)   ;;  %v3412_v23 = vld [vmem:[%s4914_s1 + $0x78] ss:$12 sps:$4 sm:$0xff] (!%p227_p9)  }
  0x18   : > { %2282 = vmatprep.subr.bf16.mxu0 %v3392_v10  ;;  %v3413_v24 = vld [vmem:[%s4914_s1 + $0x1f8] ss:$12 sps:$4 sm:$0xff]   ;;  %v3414_v25 = vld [vmem:[%s4914_s1 + $0x94] ss:$12 sps:$4 sm:$0xff]   ;;  %v3418_v27 = vld [vmem:[%s4914_s1 + $0x90] ss:$12 sps:$4 sm:$0xff]  }
  0x19   : > { %v3416_v26 = vld [vmem:[%s4914_s1 + $0x214] ss:$12 sps:$4 sm:$0xff]   ;;  %v3419_v28 = vld [vmem:[%s4914_s1 + $0x210] ss:$12 sps:$4 sm:$0xff]   ;;  %v3420_v29 = vld [vmem:[%s4914_s1 + $0xac] ss:$12 sps:$4 sm:$0xff]  }
  0x1a   : > { %2242 = vmatpush1.bf16.msra.mxu1 %v3394_v11  ;;  %v3422_v30 = vld [vmem:[%s4914_s1 + $0x22c] ss:$12 sps:$4 sm:$0xff]   ;;  %v3424_v31 = vld [vmem:[%s4914_s1 + $0xa8] ss:$12 sps:$4 sm:$0xff]   ;;  %v3426_v33 = vld [vmem:[%s4914_s1 + $0xc4] ss:$12 sps:$4 sm:$0xff]  }
  0x1b   : > { %2283 = vmatpush1.bf16.msra.mxu0 %v3395_v12  ;;  %2243 = vmatprep.subr.bf16.mxu1 %v3396_v13  ;;  %v3425_v32 = vld [vmem:[%s4914_s1 + $0x228] ss:$12 sps:$4 sm:$0xff]   ;;  %v3428_v34 = vld [vmem:[%s4914_s1 + $0x244] ss:$12 sps:$4 sm:$0xff]   ;;  %v3430_v35 = vld [vmem:[%s4914_s1 + $0xc0] ss:$12 sps:$4 sm:$0xff]  }
  0x1c   : > { %2284 = vmatprep.subr.bf16.mxu0 %v3398_v14  ;;  %v3431_v36 = vld [vmem:[%s4914_s1 + $0x240] ss:$12 sps:$4 sm:$0xff]   ;;  %s4028_s18 = scalar_select %p260_p10, %s3891_s4, 2  ;;  %v3432_v37 = vld [vmem:[%s4914_s1 + $0xdc] ss:$12 sps:$4 sm:$0xff]   ;;  %vm2747_vm0 = vcmask 523264  }
  0x1d   : > { %v3434_v38 = vld [vmem:[%s4914_s1 + $0x25c] ss:$12 sps:$4 sm:$0xff]   ;;  %v3436_v39 = vld [vmem:[%s4914_s1 + $0xd8] ss:$12 sps:$4 sm:$0xff]   ;;  %v3438_v41 = vld [vmem:[%s4914_s1 + $0xf4] ss:$12 sps:$4 sm:$0xff]  }
  0x1e   : > { %2244 = vmatpush1.bf16.msra.mxu1 %v3400_v15  ;;  %s3335_s30 = smul.u32 96, %s4028_s18  ;;  %v3437_v40 = vld [vmem:[%s4914_s1 + $0x258] ss:$12 sps:$4 sm:$0xff]   ;;  %v3440_v42 = vld [vmem:[%s4914_s1 + $0x274] ss:$12 sps:$4 sm:$0xff]   ;;  %s2889_s20 = sshll.u32 %s3891_s4, 3 }
  0x1f   : > { %2285 = vmatpush1.bf16.msra.mxu0 %v3401_v16  ;;  %2245 = vmatprep.subr.bf16.mxu1 %v3402_v17  ;;  %v3442_v43 = vld [vmem:[%s4914_s1 + $0xf0] ss:$12 sps:$4 sm:$0xff]   ;;  %v3444_v45 = vld [vmem:[%s4914_s1 + $0x10c] ss:$12 sps:$4 sm:$0xff]   ;;  %v3448_v50 = vld [vmem:[%s4914_s1 + $0x108] ss:$12 sps:$4 sm:$0xff]  }
  0x20   : > { %2286 = vmatprep.subr.bf16.mxu0 %v3404_v18  ;;  %v3443_v44 = vld [vmem:[%s4914_s1 + $0x270] ss:$12 sps:$4 sm:$0xff]   ;;  %s4058_s27 = scalar_lea.vmem %s4913_s0, %s3335_s30  ;;  %v3446_v46 = vld [vmem:[%s4914_s1 + $0x28c] ss:$12 sps:$4 sm:$0xff]   ;;  %v3449_v51 = vld [vmem:[%s4914_s1 + $0x288] ss:$12 sps:$4 sm:$0xff]  }
  0x21   : > { %v277_v47 = vld [vmem:[%s4058_s27 + $0x8] sm:$0xff]  ;;  %v279_v49 = vld [vmem:[%s4058_s27 + $0x18] sm:$0xff]  ;;  %v3450_v53 = vld [vmem:[%s4914_s1 + $0x124] ss:$12 sps:$4 sm:$0xff]   ;;  %s2888_s21 = sshll.u32 %s4028_s18, 3  ;;  %vm2784_vm4 = vcmask 7168  }
  0x22   : > { %2246 = vmatpush1.bf16.msra.mxu1 %v3406_v19  ;;  %v4067_v48 = vpack.c.bf16 %v277_v47, %v277_v47  ;;  %v4076_v52 = vpack.c.bf16 %v279_v49, %v279_v49  ;;  %v3452_v54 = vld [vmem:[%s4914_s1 + $0x2a4] ss:$12 sps:$4 sm:$0xff]   ;;  %v3454_v55 = vld [vmem:[%s4914_s1 + $0x120] ss:$12 sps:$4 sm:$0xff]   ;;  %v3456_v57 = vld [vmem:[%s4914_s1 + $0x13c] ss:$12 sps:$4 sm:$0xff]   ;;  %s268_s10 = scalar_lea.vmem %s4918_s5, %s2888_s21 }
  0x23   : > { %2287 = vmatpush1.bf16.msra.mxu0 %v3407_v20  ;;  %2247 = vmatprep.subr.bf16.mxu1 %v3408_v21  ;;  %v3455_v56 = vld [vmem:[%s4914_s1 + $0x2a0] ss:$12 sps:$4 sm:$0xff]   ;;  %v3458_v58 = vld [vmem:[%s4914_s1 + $0x2bc] ss:$12 sps:$4 sm:$0xff]   ;;  %v3460_v59 = vld [vmem:[%s4914_s1 + $0x138] ss:$12 sps:$4 sm:$0xff]  }
  0x24   : > { %2288 = vmatprep.subr.bf16.mxu0 %v3410_v22  ;;  %2269 = vmatprep.mubr.bf16.mxu1 %v4067_v48  ;;  %v3461_v60 = vld [vmem:[%s4914_s1 + $0x2b8] ss:$12 sps:$4 sm:$0xff]   ;;  %v3462_v61 = vld [vmem:[%s4914_s1 + $0x154] ss:$12 sps:$4 sm:$0xff]   ;;  %v3466_v63 = vld [vmem:[%s4914_s1 + $0x150] ss:$12 sps:$4 sm:$0xff]  }
  0x25   : > { %2310 = vmatprep.mubr.bf16.mxu0 %v4076_v52  ;;  %v3464_v62 = vld [vmem:[%s4914_s1 + $0x2d4] ss:$12 sps:$4 sm:$0xff]   ;;  %v3467_v0 = vld [vmem:[%s4914_s1 + $0x2d0] ss:$12 sps:$4 sm:$0xff]   ;;  %v3468_v1 = vld [vmem:[%s4914_s1 + $0x16c] ss:$12 sps:$4 sm:$0xff]  }
  0x26   : > { %2248 = vmatpush1.bf16.msra.mxu1 %v3412_v23  ;;  %v3470_v2 = vld [vmem:[%s4914_s1 + $0x2ec] ss:$12 sps:$4 sm:$0xff]   ;;  %v3472_v3 = vld [vmem:[%s4914_s1 + $0x168] ss:$12 sps:$4 sm:$0xff]   ;;  %v276_v5 = vld [vmem:[%s4058_s27] sm:$0xff]  ;;  %s257_s18 = sand.u32 1, %s3820_s24  }
  0x27   : > { %2289 = vmatpush1.bf16.msra.mxu0 %v3413_v24  ;;  %2249 = vmatprep.subr.bf16.mxu1 %v3414_v25  ;;  %v3473_v4 = vld [vmem:[%s4914_s1 + $0x2e8] ss:$12 sps:$4 sm:$0xff]   ;;  %v3476_v7 = vld [vmem:[%s4914_s1 + $0x304] ss:$12 sps:$4 sm:$0xff]   ;;  %v3474_v9 = vld [vmem:[%s4914_s1 + $0x300] ss:$12 sps:$4 sm:$0xff]   ;;  %v4139_v10 = vpack.c.bf16 %v276_v5, %v276_v5 }
  0x28   : > { %2290 = vmatprep.subr.bf16.mxu0 %v3416_v26  ;;  %v278_v6 = vld [vmem:[%s4058_s27 + $0x10] sm:$0xff]  ;;  %v3481_v13 = vld [vmem:[%s4914_s1 + $0x31c] ss:$12 sps:$4 sm:$0xff]   ;;  %v3482_v14 = vld [vmem:[%s4914_s1 + $0xe0] ss:$12 sps:$4 sm:$0xff]   ;;  %s2886_s11 = sshll.u32 %s257_s18, 3 }
  0x29   : > { %v3477_v8 = vld [vmem:[%s4914_s1 + $0xc8] ss:$12 sps:$4 sm:$0xff]   ;;  %v4141_v11 = vpack.c.bf16 %v278_v6, %v278_v6  ;;  %v3479_v15 = vld [vmem:[%s4914_s1 + $0x318] ss:$12 sps:$4 sm:$0xff]   ;;  %v3483_v16 = vld [vmem:[%s4914_s1 + $0x20] ss:$12 sps:$4 sm:$0xff]  }
  0x2a   : > { %2250 = vmatpush1.bf16.msra.mxu1 %v3418_v27  ;;  %v3478_v12 = vld [vmem:[%s4914_s1 + $0x8] ss:$12 sps:$4 sm:$0xff]   ;;  %v3487_v18 = vld [vmem:[%s4914_s1 + $0xf8] ss:$12 sps:$4 sm:$0xff]   ;;  %v3484_v19 = vld [vmem:[%s4914_s1 + $0x330] ss:$12 sps:$4 sm:$0xff]  }
  0x2b   : > { %2291 = vmatpush1.bf16.msra.mxu0 %v3419_v28  ;;  %2251 = vmatprep.subr.bf16.mxu1 %v3420_v29  ;;  %v3486_v17 = vld [vmem:[%s4914_s1 + $0x334] ss:$12 sps:$4 sm:$0xff]   ;;  %v3488_v20 = vld [vmem:[%s4914_s1 + $0x38] ss:$12 sps:$4 sm:$0xff]   ;;  %v3492_v22 = vld [vmem:[%s4914_s1 + $0x110] ss:$12 sps:$4 sm:$0xff]  }
  0x2c   : > { %2292 = vmatprep.subr.bf16.mxu0 %v3422_v30  ;;  %v3491_v21 = vld [vmem:[%s4914_s1 + $0x34c] ss:$12 sps:$4 sm:$0xff]   ;;  %v3489_v23 = vld [vmem:[%s4914_s1 + $0x348] ss:$12 sps:$4 sm:$0xff]   ;;  %v3493_v24 = vld [vmem:[%s4914_s1 + $0x50] ss:$12 sps:$4 sm:$0xff]  }
  0x2d   : > { %v3496_v25 = vld [vmem:[%s4914_s1 + $0x364] ss:$12 sps:$4 sm:$0xff]   ;;  %v3497_v26 = vld [vmem:[%s4914_s1 + $0x128] ss:$12 sps:$4 sm:$0xff]   ;;  %v3494_v27 = vld [vmem:[%s4914_s1 + $0x360] ss:$12 sps:$4 sm:$0xff]  }
  0x2e   : > { %2252 = vmatpush1.bf16.msra.mxu1 %v3424_v31  ;;  %v3498_v28 = vld [vmem:[%s4914_s1 + $0x68] ss:$12 sps:$4 sm:$0xff]   ;;  %v3502_v30 = vld [vmem:[%s4914_s1 + $0x140] ss:$12 sps:$4 sm:$0xff]   ;;  %v3499_v31 = vld [vmem:[%s4914_s1 + $0x378] ss:$12 sps:$4 sm:$0xff]  }
  0x2f   : > { %2293 = vmatpush1.bf16.msra.mxu0 %v3425_v32  ;;  %2253 = vmatprep.subr.bf16.mxu1 %v3426_v33  ;;  %v3501_v29 = vld [vmem:[%s4914_s1 + $0x37c] ss:$12 sps:$4 sm:$0xff]   ;;  %v3503_v32 = vld [vmem:[%s4914_s1 + $0x80] ss:$12 sps:$4 sm:$0xff]   ;;  %v3548_v6 = vld [vmem:[%s4914_s1 + $0x218] ss:$12 sps:$4 sm:$0xff]  }
  0x30   : > { %2294 = vmatprep.subr.bf16.mxu0 %v3428_v34  ;;  %v3506_v33 = vld [vmem:[%s4914_s1 + $0x394] ss:$12 sps:$4 sm:$0xff]   ;;  %v3507_v34 = vld [vmem:[%s4914_s1 + $0x158] ss:$12 sps:$4 sm:$0xff]   ;;  %v281_v47 = vld [vmem:[%s4058_s27 + $0x28] sm:$0xff]  ;;  %s259_s12 = scalar_lea.vmem [#allocation3], %s2886_s11 }
  0x31   : > { %v4255_v49 = vpack.c.bf16 %v281_v47, %v281_v47  ;;  %v3544_v5 = vld [vmem:[%s4914_s1 + $0x450] ss:$12 sps:$4 sm:$0xff]   ;;  %s2811_s30 = sshll.u32 %s259_s12, 4  ;;  %s3180_s13 = sshll.u32 %s3891_s4, 7  ;;  %s4868_s30 = int_to_ptr.vmem [resolvable:$true] %s2811_s30 }
  0x32   : > { %2254 = vmatpush1.bf16.msra.mxu1 %v3430_v35  ;;  %v3504_v35 = vld [vmem:[%s4914_s1 + $0x390] ss:$12 sps:$4 sm:$0xff]   ;;  %s4873_s17 = scalar_lea.hbm %s4919_s6, %s3180_s13  ;;  %s3766_s19 = scalar_lea.vmem %s4868_s30, 128 }
  0x33   : > { %2295 = vmatpush1.bf16.msra.mxu0 %v3431_v36  ;;  %2255 = vmatprep.subr.bf16.mxu1 %v3432_v37  ;;  %v3508_v36 = vld [vmem:[%s4914_s1 + $0x98] ss:$12 sps:$4 sm:$0xff]   ;;  %p3767_p11 = scmp.ne.s32.totalorder %s4868_s30, %s3766_s19  ;;  %s3831_s4 = smov [#allocation3]  }
  0x34   : > { %2296 = vmatprep.subr.bf16.mxu0 %v3434_v38  ;;  %v3511_v37 = vld [vmem:[%s4914_s1 + $0x3ac] ss:$12 sps:$4 sm:$0xff]   ;;  %v3512_v38 = vld [vmem:[%s4914_s1 + $0x170] ss:$12 sps:$4 sm:$0xff]  }
  0x35   : > { %v3596_v47 = vld [vmem:[%s4914_s1 + $0x544] ss:$12 sps:$4 sm:$0xff]   ;;  %p3768_p12 = pnand %p3767_p11, %p3908_p5 }
  0x36   : > { %2256 = vmatpush1.bf16.msra.mxu1 %v3436_v39  ;;  %v3509_v39 = vld [vmem:[%s4914_s1 + $0x3a8] ss:$12 sps:$4 sm:$0xff]  }
  0x37   : > { %2297 = vmatpush1.bf16.msra.mxu0 %v3437_v40  ;;  %2257 = vmatprep.subr.bf16.mxu1 %v3438_v41  ;;  %v3513_v40 = vld [vmem:[%s4914_s1 + $0xb0] ss:$12 sps:$4 sm:$0xff]   ;;  %p3769_p13 = pneg %p3768_p12 }
  0x38   : > { %2298 = vmatprep.subr.bf16.mxu0 %v3440_v42  ;;  %v3516_v41 = vld [vmem:[%s4914_s1 + $0x3c4] ss:$12 sps:$4 sm:$0xff]   ;;  %v3517_v42 = vld [vmem:[%s4914_s1 + $0x248] ss:$12 sps:$4 sm:$0xff]  }
  0x3a   : > { %2258 = vmatpush1.bf16.msra.mxu1 %v3442_v43  ;;  %v3514_v43 = vld [vmem:[%s4914_s1 + $0x3c0] ss:$12 sps:$4 sm:$0xff]  }
  0x3b   : > { %2299 = vmatpush1.bf16.msra.mxu0 %v3443_v44  ;;  %2259 = vmatprep.subr.bf16.mxu1 %v3444_v45  ;;  %v3518_v44 = vld [vmem:[%s4914_s1 + $0x188] ss:$12 sps:$4 sm:$0xff]  }
  0x3c   : > { %2300 = vmatprep.subr.bf16.mxu0 %v3446_v46  ;;  %v3521_v45 = vld [vmem:[%s4914_s1 + $0x3dc] ss:$12 sps:$4 sm:$0xff]   ;;  %v3522_v46 = vld [vmem:[%s4914_s1 + $0x260] ss:$12 sps:$4 sm:$0xff]  }
  0x3e   : > { %2260 = vmatpush1.bf16.msra.mxu1 %v3448_v50  ;;  %v3523_v50 = vld [vmem:[%s4914_s1 + $0x1a0] ss:$12 sps:$4 sm:$0xff]  }
  0x3f   : > { %2301 = vmatpush1.bf16.msra.mxu0 %v3449_v51  ;;  %2261 = vmatprep.subr.bf16.mxu1 %v3450_v53  ;;  %v3526_v51 = vld [vmem:[%s4914_s1 + $0x3f4] ss:$12 sps:$4 sm:$0xff]   ;;  %v3527_v53 = vld [vmem:[%s4914_s1 + $0x278] ss:$12 sps:$4 sm:$0xff]  }
  0x40   : > { %2302 = vmatprep.subr.bf16.mxu0 %v3452_v54  ;;  %v3524_v54 = vld [vmem:[%s4914_s1 + $0x3f0] ss:$12 sps:$4 sm:$0xff]  }
  0x42   : > { %2262 = vmatpush1.bf16.msra.mxu1 %v3454_v55  ;;  %v3528_v55 = vld [vmem:[%s4914_s1 + $0x1b8] ss:$12 sps:$4 sm:$0xff]  }
  0x43   : > { %2303 = vmatpush1.bf16.msra.mxu0 %v3455_v56  ;;  %2263 = vmatprep.subr.bf16.mxu1 %v3456_v57  ;;  %v3531_v56 = vld [vmem:[%s4914_s1 + $0x40c] ss:$12 sps:$4 sm:$0xff]   ;;  %v3529_v57 = vld [vmem:[%s4914_s1 + $0x408] ss:$12 sps:$4 sm:$0xff]  }
  0x44   : > { %2304 = vmatprep.subr.bf16.mxu0 %v3458_v58  ;;  %v3533_v58 = vld [vmem:[%s4914_s1 + $0x1d0] ss:$12 sps:$4 sm:$0xff]  }
  0x46   : > { %2264 = vmatpush1.bf16.msra.mxu1 %v3460_v59  ;;  %v3536_v59 = vld [vmem:[%s4914_s1 + $0x424] ss:$12 sps:$4 sm:$0xff]  }
  0x47   : > { %2305 = vmatpush1.bf16.msra.mxu0 %v3461_v60  ;;  %2265 = vmatprep.subr.bf16.mxu1 %v3462_v61  ;;  %v3537_v60 = vld [vmem:[%s4914_s1 + $0x2a8] ss:$12 sps:$4 sm:$0xff]   ;;  %v3534_v61 = vld [vmem:[%s4914_s1 + $0x420] ss:$12 sps:$4 sm:$0xff]  }
  0x48   : > { %2306 = vmatprep.subr.bf16.mxu0 %v3464_v62  ;;  %v3538_v62 = vld [vmem:[%s4914_s1 + $0x1e8] ss:$12 sps:$4 sm:$0xff]  }
  0x4a   : > { %2266 = vmatpush1.bf16.msra.mxu1 %v3466_v63  ;;  %v3541_v63 = vld [vmem:[%s4914_s1 + $0x43c] ss:$12 sps:$4 sm:$0xff]  }
  0x4b   : > { %2307 = vmatpush1.bf16.msra.mxu0 %v3467_v0  ;;  %2267 = vmatprep.subr.bf16.mxu1 %v3468_v1  ;;  %v3542_v0 = vld [vmem:[%s4914_s1 + $0x2c0] ss:$12 sps:$4 sm:$0xff]   ;;  %v3539_v1 = vld [vmem:[%s4914_s1 + $0x438] ss:$12 sps:$4 sm:$0xff]  }
  0x4c   : > { %2308 = vmatprep.subr.bf16.mxu0 %v3470_v2  ;;  %v3543_v2 = vld [vmem:[%s4914_s1 + $0x200] ss:$12 sps:$4 sm:$0xff]  }
  0x4e   : > { %2268 = vmatpush1.bf16.msra.mxu1 %v3472_v3  ;;  %v3546_v3 = vld [vmem:[%s4914_s1 + $0x454] ss:$12 sps:$4 sm:$0xff]  }
  0x4f   : > { %2309 = vmatpush1.bf16.msra.mxu0 %v3473_v4  ;;  %3183 = vmatprep.subr.bf16.mxu1 %v3477_v8  ;;  %v3547_v4 = vld [vmem:[%s4914_s1 + $0x2d8] ss:$12 sps:$4 sm:$0xff]   ;;  %v3552_v8 = vld [vmem:[%s4914_s1 + $0x2f0] ss:$12 sps:$4 sm:$0xff]  }
  0x50   : > { %2319 = vmatprep.subr.bf16.mxu0 %v3476_v7  ;;  %v3551_v7 = vld [vmem:[%s4914_s1 + $0x46c] ss:$12 sps:$4 sm:$0xff]  }
  0x51   : > { %2270 = vmatmul.mubr.bf16.vlgmr.msra.gmra.mrb[0].mxu1 %v4139_v10 }
  0x52   : > { %2311 = vmatmul.mubr.bf16.vlgmr.msra.gmra.mrb[0].mxu0 %v4141_v11  ;;  %3184 = vmatpush3.bf16.msra.mxu1 %v3478_v12  ;;  %v280_v12 = vld [vmem:[%s4058_s27 + $0x20] sm:$0xff] }
  0x53   : > { %2320 = vmatpush1.bf16.msra.mxu0 %v3474_v9  ;;  %3185 = vmatprep.subr.bf16.mxu1 %v3482_v14  ;;  %v3549_v9 = vld [vmem:[%s4914_s1 + $0x468] ss:$12 sps:$4 sm:$0xff]  }
  0x54   : > { %2321 = vmatprep.subr.bf16.mxu0 %v3481_v13  ;;  %2515 = vmatprep.mubr.bf16.mxu1 %v4067_v48  ;;  %v3519_v48 = vld [vmem:[%s4914_s1 + $0x3d8] ss:$12 sps:$4 sm:$0xff]   ;;  %v3557_v14 = vld [vmem:[%s4914_s1 + $0x3c8] ss:$12 sps:$4 sm:$0xff]  }
  0x55   : > { %2351 = vmatprep.mubr.bf16.mxu0 %v4255_v49  ;;  %v3556_v13 = vld [vmem:[%s4914_s1 + $0x484] ss:$12 sps:$4 sm:$0xff]  }
  0x56   : > { %3186 = vmatpush3.bf16.msra.mxu1 %v3483_v16  ;;  %v4345_v16 = vpack.c.bf16 %v280_v12, %v280_v12  ;;  %v3631_v12 = vld [vmem:[%s4914_s1 + $0x5ec] ss:$12 sps:$4 sm:$0xff]  }
  0x57   : > { %2322 = vmatpush1.bf16.msra.mxu0 %v3479_v15  ;;  %3187 = vmatprep.subr.bf16.mxu1 %v3487_v18  ;;  %v3554_v15 = vld [vmem:[%s4914_s1 + $0x480] ss:$12 sps:$4 sm:$0xff]   ;;  %v3561_v18 = vld [vmem:[%s4914_s1 + $0x49c] ss:$12 sps:$4 sm:$0xff]  }
  0x58   : > { %2323 = vmatprep.subr.bf16.mxu0 %v3486_v17  ;;  %v3558_v17 = vld [vmem:[%s4914_s1 + $0x308] ss:$12 sps:$4 sm:$0xff]  }
  0x5a   : > { %3188 = vmatpush3.bf16.msra.mxu1 %v3488_v20  ;;  %v3559_v20 = vld [vmem:[%s4914_s1 + $0x498] ss:$12 sps:$4 sm:$0xff]  }
  0x5b   : > { %2324 = vmatpush1.bf16.msra.mxu0 %v3484_v19  ;;  %3189 = vmatprep.subr.bf16.mxu1 %v3492_v22  ;;  %v3562_v19 = vld [vmem:[%s4914_s1 + $0x3e0] ss:$12 sps:$4 sm:$0xff]  }
  0x5c   : > { %2325 = vmatprep.subr.bf16.mxu0 %v3491_v21  ;;  %v3563_v21 = vld [vmem:[%s4914_s1 + $0x320] ss:$12 sps:$4 sm:$0xff]  }
  0x5d   : > { %v3566_v22 = vld [vmem:[%s4914_s1 + $0x4b4] ss:$12 sps:$4 sm:$0xff]  }
  0x5e   : > { %3190 = vmatpush3.bf16.msra.mxu1 %v3493_v24  ;;  %v3568_v24 = vld [vmem:[%s4914_s1 + $0x338] ss:$12 sps:$4 sm:$0xff]  }
  0x5f   : > { %2326 = vmatpush1.bf16.msra.mxu0 %v3489_v23  ;;  %3191 = vmatprep.subr.bf16.mxu1 %v3497_v26  ;;  %v3564_v23 = vld [vmem:[%s4914_s1 + $0x4b0] ss:$12 sps:$4 sm:$0xff]  }
  0x60   : > { %2327 = vmatprep.subr.bf16.mxu0 %v3496_v25  ;;  %v3571_v25 = vld [vmem:[%s4914_s1 + $0x4cc] ss:$12 sps:$4 sm:$0xff]   ;;  %v3572_v26 = vld [vmem:[%s4914_s1 + $0x410] ss:$12 sps:$4 sm:$0xff]  }
  0x62   : > { %3192 = vmatpush3.bf16.msra.mxu1 %v3498_v28  ;;  %v3573_v28 = vld [vmem:[%s4914_s1 + $0x350] ss:$12 sps:$4 sm:$0xff]  }
  0x63   : > { %2328 = vmatpush1.bf16.msra.mxu0 %v3494_v27  ;;  %3193 = vmatprep.subr.bf16.mxu1 %v3502_v30  ;;  %v3569_v27 = vld [vmem:[%s4914_s1 + $0x4c8] ss:$12 sps:$4 sm:$0xff]  }
  0x64   : > { %2329 = vmatprep.subr.bf16.mxu0 %v3501_v29  ;;  %v3576_v29 = vld [vmem:[%s4914_s1 + $0x4e4] ss:$12 sps:$4 sm:$0xff]   ;;  %v3577_v30 = vld [vmem:[%s4914_s1 + $0x428] ss:$12 sps:$4 sm:$0xff]  }
  0x66   : > { %3194 = vmatpush3.bf16.msra.mxu1 %v3503_v32  ;;  %v3578_v32 = vld [vmem:[%s4914_s1 + $0x368] ss:$12 sps:$4 sm:$0xff]  }
  0x67   : > { %2330 = vmatpush1.bf16.msra.mxu0 %v3499_v31  ;;  %3195 = vmatprep.subr.bf16.mxu1 %v3507_v34  ;;  %v3574_v31 = vld [vmem:[%s4914_s1 + $0x4e0] ss:$12 sps:$4 sm:$0xff]  }
  0x68   : > { %2331 = vmatprep.subr.bf16.mxu0 %v3506_v33  ;;  %v3581_v33 = vld [vmem:[%s4914_s1 + $0x4fc] ss:$12 sps:$4 sm:$0xff]   ;;  %v3582_v34 = vld [vmem:[%s4914_s1 + $0x440] ss:$12 sps:$4 sm:$0xff]  }
  0x6a   : > { %3196 = vmatpush3.bf16.msra.mxu1 %v3508_v36  ;;  %v3583_v36 = vld [vmem:[%s4914_s1 + $0x380] ss:$12 sps:$4 sm:$0xff]  }
  0x6b   : > { %2332 = vmatpush1.bf16.msra.mxu0 %v3504_v35  ;;  %3197 = vmatprep.subr.bf16.mxu1 %v3512_v38  ;;  %v3579_v35 = vld [vmem:[%s4914_s1 + $0x4f8] ss:$12 sps:$4 sm:$0xff]  }
  0x6c   : > { %2333 = vmatprep.subr.bf16.mxu0 %v3511_v37  ;;  %v3586_v37 = vld [vmem:[%s4914_s1 + $0x514] ss:$12 sps:$4 sm:$0xff]   ;;  %v3587_v38 = vld [vmem:[%s4914_s1 + $0x458] ss:$12 sps:$4 sm:$0xff]  }
  0x6e   : > { %3198 = vmatpush3.bf16.msra.mxu1 %v3513_v40  ;;  %v283_v40 = vld [vmem:[%s4058_s27 + $0x38] sm:$0xff] }
  0x6f   : > { %2334 = vmatpush1.bf16.msra.mxu0 %v3509_v39  ;;  %3205 = vmatprep.subr.bf16.mxu1 %v3517_v42  ;;  %v3584_v39 = vld [vmem:[%s4914_s1 + $0x510] ss:$12 sps:$4 sm:$0xff]   ;;  %v3591_v42 = vld [vmem:[%s4914_s1 + $0x52c] ss:$12 sps:$4 sm:$0xff]  }
  0x70   : > { %2335 = vmatprep.subr.bf16.mxu0 %v3516_v41  ;;  %v3588_v41 = vld [vmem:[%s4914_s1 + $0x398] ss:$12 sps:$4 sm:$0xff]  }
  0x71   : > { %2516 = vmatmul.mubr.bf16.vlgmr.msra.gmra.mrb[4].mxu1 %v4139_v10  ;;  %v3553_v10 = vld [vmem:[%s4914_s1 + $0x230] ss:$12 sps:$4 sm:$0xff]  }
  0x72   : > { %3206 = vmatpush3.bf16.msra.mxu1 %v3518_v44  ;;  %2555 = vmatprep.mubr.bf16.mxu1 %v4076_v52  ;;  %v3532_v52 = vld [vmem:[%s4914_s1 + $0x290] ss:$12 sps:$4 sm:$0xff]  }
  0x73   : > { %2336 = vmatpush1.bf16.msra.mxu0 %v3514_v43  ;;  %3207 = vmatprep.subr.bf16.mxu1 %v3522_v46  ;;  %v295_v43 = vpack.c.bf16 %v283_v40, %v283_v40  ;;  %v3592_v44 = vld [vmem:[%s4914_s1 + $0x470] ss:$12 sps:$4 sm:$0xff]   ;;  %v3662_v40 = vld [vmem:[%s4914_s1 + $0x740] ss:$12 sps:$4 sm:$0xff]  }
  0x74   : > { %2337 = vmatprep.subr.bf16.mxu0 %v3521_v45  ;;  %v3589_v45 = vld [vmem:[%s4914_s1 + $0x528] ss:$12 sps:$4 sm:$0xff]   ;;  %v3593_v46 = vld [vmem:[%s4914_s1 + $0x3b0] ss:$12 sps:$4 sm:$0xff]  }
  0x76   : > { %3208 = vmatpush3.bf16.msra.mxu1 %v3523_v50  ;;  %v3598_v50 = vld [vmem:[%s4914_s1 + $0x488] ss:$12 sps:$4 sm:$0xff]  }
  0x77   : > { %2338 = vmatpush1.bf16.msra.mxu0 %v3519_v48  ;;  %3209 = vmatprep.subr.bf16.mxu1 %v3527_v53  ;;  %v3597_v48 = vld [vmem:[%s4914_s1 + $0x548] ss:$12 sps:$4 sm:$0xff]   ;;  %v3602_v53 = vld [vmem:[%s4914_s1 + $0x560] ss:$12 sps:$4 sm:$0xff]  }
  0x78   : > { %2339 = vmatprep.subr.bf16.mxu0 %v3526_v51  ;;  %v3601_v51 = vld [vmem:[%s4914_s1 + $0x55c] ss:$12 sps:$4 sm:$0xff]  }
  0x7a   : > { %3210 = vmatpush3.bf16.msra.mxu1 %v3528_v55  ;;  %v3603_v55 = vld [vmem:[%s4914_s1 + $0x4a0] ss:$12 sps:$4 sm:$0xff]  }
  0x7b   : > { %2340 = vmatpush1.bf16.msra.mxu0 %v3524_v54  ;;  %3211 = vmatprep.subr.bf16.mxu1 %v3532_v52  ;;  %v3599_v54 = vld [vmem:[%s4914_s1 + $0x558] ss:$12 sps:$4 sm:$0xff]  }
  0x7c   : > { %2341 = vmatprep.subr.bf16.mxu0 %v3531_v56  ;;  %v3606_v56 = vld [vmem:[%s4914_s1 + $0x574] ss:$12 sps:$4 sm:$0xff]   ;;  %v3607_v52 = vld [vmem:[%s4914_s1 + $0x578] ss:$12 sps:$4 sm:$0xff]  }
  0x7e   : > { %3212 = vmatpush3.bf16.msra.mxu1 %v3533_v58  ;;  %v3608_v58 = vld [vmem:[%s4914_s1 + $0x4b8] ss:$12 sps:$4 sm:$0xff]  }
  0x7f   : > { %2342 = vmatpush1.bf16.msra.mxu0 %v3529_v57  ;;  %3213 = vmatprep.subr.bf16.mxu1 %v3537_v60  ;;  %v3604_v57 = vld [vmem:[%s4914_s1 + $0x570] ss:$12 sps:$4 sm:$0xff]  }
  0x80   : > { %2343 = vmatprep.subr.bf16.mxu0 %v3536_v59  ;;  %v3611_v59 = vld [vmem:[%s4914_s1 + $0x58c] ss:$12 sps:$4 sm:$0xff]   ;;  %v3612_v60 = vld [vmem:[%s4914_s1 + $0x590] ss:$12 sps:$4 sm:$0xff]  }
  0x82   : > { %3214 = vmatpush3.bf16.msra.mxu1 %v3538_v62  ;;  %v3613_v62 = vld [vmem:[%s4914_s1 + $0x4d0] ss:$12 sps:$4 sm:$0xff]  }
  0x83   : > { %2344 = vmatpush1.bf16.msra.mxu0 %v3534_v61  ;;  %3215 = vmatprep.subr.bf16.mxu1 %v3542_v0  ;;  %v3609_v61 = vld [vmem:[%s4914_s1 + $0x588] ss:$12 sps:$4 sm:$0xff]  }
  0x84   : > { %2345 = vmatprep.subr.bf16.mxu0 %v3541_v63  ;;  %v3616_v63 = vld [vmem:[%s4914_s1 + $0x5a4] ss:$12 sps:$4 sm:$0xff]   ;;  %v3617_v0 = vld [vmem:[%s4914_s1 + $0x5a8] ss:$12 sps:$4 sm:$0xff]  }
  0x86   : > { %3216 = vmatpush3.bf16.msra.mxu1 %v3543_v2  ;;  %v3618_v2 = vld [vmem:[%s4914_s1 + $0x4e8] ss:$12 sps:$4 sm:$0xff]  }
  0x87   : > { %2346 = vmatpush1.bf16.msra.mxu0 %v3539_v1  ;;  %3217 = vmatprep.subr.bf16.mxu1 %v3547_v4  ;;  %v3614_v1 = vld [vmem:[%s4914_s1 + $0x5a0] ss:$12 sps:$4 sm:$0xff]  }
  0x88   : > { %2347 = vmatprep.subr.bf16.mxu0 %v3546_v3  ;;  %v3621_v3 = vld [vmem:[%s4914_s1 + $0x5bc] ss:$12 sps:$4 sm:$0xff]   ;;  %v3622_v4 = vld [vmem:[%s4914_s1 + $0x5c0] ss:$12 sps:$4 sm:$0xff]  }
  0x8a   : > { %3218 = vmatpush3.bf16.msra.mxu1 %v3548_v6  ;;  %v3623_v6 = vld [vmem:[%s4914_s1 + $0x500] ss:$12 sps:$4 sm:$0xff]  }
  0x8b   : > { %2348 = vmatpush1.bf16.msra.mxu0 %v3544_v5  ;;  %3219 = vmatprep.subr.bf16.mxu1 %v3552_v8  ;;  %v3619_v5 = vld [vmem:[%s4914_s1 + $0x5b8] ss:$12 sps:$4 sm:$0xff]  }
  0x8c   : > { %2349 = vmatprep.subr.bf16.mxu0 %v3551_v7  ;;  %v3626_v7 = vld [vmem:[%s4914_s1 + $0x5d4] ss:$12 sps:$4 sm:$0xff]   ;;  %v3627_v8 = vld [vmem:[%s4914_s1 + $0x5d8] ss:$12 sps:$4 sm:$0xff]  }
  0x8e   : > { %3220 = vmatpush3.bf16.msra.mxu1 %v3553_v10  ;;  %v3628_v10 = vld [vmem:[%s4914_s1 + $0x518] ss:$12 sps:$4 sm:$0xff]  }
  0x8f   : > { %2350 = vmatpush1.bf16.msra.mxu0 %v3549_v9  ;;  %3227 = vmatprep.subr.bf16.mxu1 %v3557_v14  ;;  %v3624_v9 = vld [vmem:[%s4914_s1 + $0x5d0] ss:$12 sps:$4 sm:$0xff]   ;;  %v3629_v14 = vld [vmem:[%s4914_s1 + $0x5e8] ss:$12 sps:$4 sm:$0xff]  }
  0x90   : > { %2360 = vmatprep.subr.bf16.mxu0 %v3556_v13  ;;  %v3632_v13 = vld [vmem:[%s4914_s1 + $0x5f0] ss:$12 sps:$4 sm:$0xff]  }
  0x91   : > { %2556 = vmatmul.mubr.bf16.vlgmr.msra.gmra.mrb[8].mxu1 %v4141_v11  ;;  %v3567_v11 = vld [vmem:[%s4914_s1 + $0x3f8] ss:$12 sps:$4 sm:$0xff]  }
  0x92   : > { %2352 = vmatmul.mubr.bf16.vlgmr.msra.gmra.mrb[0].mxu0 %v4345_v16  ;;  %3228 = vmatpush3.bf16.msra.mxu1 %v3558_v17  ;;  %v282_v17 = vld [vmem:[%s4058_s27 + $0x30] sm:$0xff] }
  0x93   : > { %2361 = vmatpush1.bf16.msra.mxu0 %v3554_v15  ;;  %3229 = vmatprep.subr.bf16.mxu1 %v3562_v19  ;;  %v3633_v15 = vld [vmem:[%s4914_s1 + $0x530] ss:$12 sps:$4 sm:$0xff]   ;;  %v3634_v19 = vld [vmem:[%s4914_s1 + $0x600] ss:$12 sps:$4 sm:$0xff]  }
  0x94   : > { %2362 = vmatprep.subr.bf16.mxu0 %v3561_v18  ;;  %2595 = vmatprep.mubr.bf16.mxu1 %v4255_v49  ;;  %v3594_v49 = vld [vmem:[%s4914_s1 + $0x540] ss:$12 sps:$4 sm:$0xff]   ;;  %v3637_v18 = vld [vmem:[%s4914_s1 + $0x6c8] ss:$12 sps:$4 sm:$0xff]  }
  0x95   : > { %2392 = vmatprep.mubr.bf16.mxu0 %v295_v43 }
  0x96   : > { %3230 = vmatpush3.bf16.msra.mxu1 %v3563_v21  ;;  %v285_v21 = vld [vmem:[%s4058_s27 + $0x48] sm:$0xff] }
  0x97   : > { %2363 = vmatpush1.bf16.msra.mxu0 %v3559_v20  ;;  %3231 = vmatprep.subr.bf16.mxu1 %v3567_v11  ;;  %v294_v20 = vpack.c.bf16 %v282_v17, %v282_v17  ;;  %v3641_v11 = vld [vmem:[%s4914_s1 + $0x61c] ss:$12 sps:$4 sm:$0xff]   ;;  %v3707_v17 = vld [vmem:[%s4914_s1 + $0x8d8] ss:$12 sps:$4 sm:$0xff]  }
  0x98   : > { %2364 = vmatprep.subr.bf16.mxu0 %v3566_v22  ;;  %v3638_v22 = vld [vmem:[%s4914_s1 + $0x608] ss:$12 sps:$4 sm:$0xff]  }
  0x9a   : > { %3232 = vmatpush3.bf16.msra.mxu1 %v3568_v24  ;;  %v3639_v24 = vld [vmem:[%s4914_s1 + $0x618] ss:$12 sps:$4 sm:$0xff]  }
  0x9b   : > { %2365 = vmatpush1.bf16.msra.mxu0 %v3564_v23  ;;  %3233 = vmatprep.subr.bf16.mxu1 %v3572_v26  ;;  %v3642_v23 = vld [vmem:[%s4914_s1 + $0x6e0] ss:$12 sps:$4 sm:$0xff]  }
  0x9c   : > { %2366 = vmatprep.subr.bf16.mxu0 %v3571_v25  ;;  %v297_v25 = vpack.c.bf16 %v285_v21, %v285_v21  ;;  %v3643_v26 = vld [vmem:[%s4914_s1 + $0x620] ss:$12 sps:$4 sm:$0xff]   ;;  %v3712_v21 = vld [vmem:[%s4914_s1 + $0x8f0] ss:$12 sps:$4 sm:$0xff]  }
  0x9e   : > { %3234 = vmatpush3.bf16.msra.mxu1 %v3573_v28  ;;  %v3647_v28 = vld [vmem:[%s4914_s1 + $0x6f8] ss:$12 sps:$4 sm:$0xff]  }
  0x9f   : > { %2367 = vmatpush1.bf16.msra.mxu0 %v3569_v27  ;;  %3235 = vmatprep.subr.bf16.mxu1 %v3577_v30  ;;  %v3646_v27 = vld [vmem:[%s4914_s1 + $0x634] ss:$12 sps:$4 sm:$0xff]   ;;  %v3648_v30 = vld [vmem:[%s4914_s1 + $0x638] ss:$12 sps:$4 sm:$0xff]  }
  0xa0   : > { %2368 = vmatprep.subr.bf16.mxu0 %v3576_v29  ;;  %v3644_v29 = vld [vmem:[%s4914_s1 + $0x630] ss:$12 sps:$4 sm:$0xff]  }
  0xa2   : > { %3236 = vmatpush3.bf16.msra.mxu1 %v3578_v32  ;;  %v3652_v32 = vld [vmem:[%s4914_s1 + $0x710] ss:$12 sps:$4 sm:$0xff]  }
  0xa3   : > { %2369 = vmatpush1.bf16.msra.mxu0 %v3574_v31  ;;  %3237 = vmatprep.subr.bf16.mxu1 %v3582_v34  ;;  %v3651_v31 = vld [vmem:[%s4914_s1 + $0x64c] ss:$12 sps:$4 sm:$0xff]   ;;  %v3653_v34 = vld [vmem:[%s4914_s1 + $0x650] ss:$12 sps:$4 sm:$0xff]  }
  0xa4   : > { %2370 = vmatprep.subr.bf16.mxu0 %v3581_v33  ;;  %v3649_v33 = vld [vmem:[%s4914_s1 + $0x648] ss:$12 sps:$4 sm:$0xff]  }
  0xa6   : > { %3238 = vmatpush3.bf16.msra.mxu1 %v3583_v36  ;;  %v3657_v36 = vld [vmem:[%s4914_s1 + $0x728] ss:$12 sps:$4 sm:$0xff]  }
  0xa7   : > { %2371 = vmatpush1.bf16.msra.mxu0 %v3579_v35  ;;  %3239 = vmatprep.subr.bf16.mxu1 %v3587_v38  ;;  %v3656_v35 = vld [vmem:[%s4914_s1 + $0x664] ss:$12 sps:$4 sm:$0xff]   ;;  %v3658_v38 = vld [vmem:[%s4914_s1 + $0x668] ss:$12 sps:$4 sm:$0xff]  }
  0xa8   : > { %2372 = vmatprep.subr.bf16.mxu0 %v3586_v37  ;;  %v3654_v37 = vld [vmem:[%s4914_s1 + $0x660] ss:$12 sps:$4 sm:$0xff]  }
  0xaa   : > { %3240 = vmatpush3.bf16.msra.mxu1 %v3588_v41  ;;  %v3659_v41 = vld [vmem:[%s4914_s1 + $0x678] ss:$12 sps:$4 sm:$0xff]  }
  0xab   : > { %2373 = vmatpush1.bf16.msra.mxu0 %v3584_v39  ;;  %3241 = vmatprep.subr.bf16.mxu1 %v3592_v44  ;;  %v3661_v39 = vld [vmem:[%s4914_s1 + $0x67c] ss:$12 sps:$4 sm:$0xff]   ;;  %v3667_v44 = vld [vmem:[%s4914_s1 + $0x758] ss:$12 sps:$4 sm:$0xff]  }
  0xac   : > { %2374 = vmatprep.subr.bf16.mxu0 %v3591_v42  ;;  %v3663_v42 = vld [vmem:[%s4914_s1 + $0x680] ss:$12 sps:$4 sm:$0xff]  }
  0xae   : > { %3242 = vmatpush3.bf16.msra.mxu1 %v3593_v46  ;;  %v3668_v46 = vld [vmem:[%s4914_s1 + $0x698] ss:$12 sps:$4 sm:$0xff]  }
  0xaf   : > { %2375 = vmatpush1.bf16.msra.mxu0 %v3589_v45  ;;  %3249 = vmatprep.subr.bf16.mxu1 %v3597_v48  ;;  %v3664_v45 = vld [vmem:[%s4914_s1 + $0x690] ss:$12 sps:$4 sm:$0xff]  }
  0xb0   : > { %2376 = vmatprep.subr.bf16.mxu0 %v3596_v47  ;;  %v3671_v47 = vld [vmem:[%s4914_s1 + $0x6ac] ss:$12 sps:$4 sm:$0xff]   ;;  %v3672_v48 = vld [vmem:[%s4914_s1 + $0x770] ss:$12 sps:$4 sm:$0xff]  }
  0xb1   : > { %2596 = vmatmul.mubr.bf16.vlgmr.msra.gmra.mrb[12].mxu1 %v4345_v16  ;;  %v3636_v16 = vld [vmem:[%s4914_s1 + $0x604] ss:$12 sps:$4 sm:$0xff]  }
  0xb2   : > { %3250 = vmatpush3.bf16.msra.mxu1 %v3598_v50  ;;  %2635 = vmatprep.mubr.bf16.mxu1 %v295_v43  ;;  %v3666_v43 = vld [vmem:[%s4914_s1 + $0x694] ss:$12 sps:$4 sm:$0xff]   ;;  %v3673_v50 = vld [vmem:[%s4914_s1 + $0x6b0] ss:$12 sps:$4 sm:$0xff]  }
  0xb3   : > { %2377 = vmatpush1.bf16.msra.mxu0 %v3594_v49  ;;  %3251 = vmatprep.subr.bf16.mxu1 %v3602_v53  ;;  %v3669_v49 = vld [vmem:[%s4914_s1 + $0x6a8] ss:$12 sps:$4 sm:$0xff]   ;;  %v284_v53 = vld [vmem:[%s4058_s27 + $0x40] sm:$0xff] }
  0xb4   : > { %2378 = vmatprep.subr.bf16.mxu0 %v3601_v51  ;;  %v3676_v51 = vld [vmem:[%s4914_s1 + $0x6c4] ss:$12 sps:$4 sm:$0xff]  }
  0xb6   : > { %3252 = vmatpush3.bf16.msra.mxu1 %v3603_v55  ;;  %v3674_v55 = vld [vmem:[%s4914_s1 + $0x6c0] ss:$12 sps:$4 sm:$0xff]  }
  0xb7   : > { %2379 = vmatpush1.bf16.msra.mxu0 %v3599_v54  ;;  %3253 = vmatprep.subr.bf16.mxu1 %v3607_v52  ;;  %v3677_v54 = vld [vmem:[%s4914_s1 + $0x848] ss:$12 sps:$4 sm:$0xff]  }
  0xb8   : > { %2380 = vmatprep.subr.bf16.mxu0 %v3606_v56  ;;  %v4643_v56 = vpack.c.bf16 %v284_v53, %v284_v53  ;;  %v3678_v52 = vld [vmem:[%s4914_s1 + $0x788] ss:$12 sps:$4 sm:$0xff]  }
  0xb9   : > { %v3747_v53 = vld [vmem:[%s4914_s1 + $0x888] ss:$12 sps:$4 sm:$0xff]  }
  0xba   : > { %3254 = vmatpush3.bf16.msra.mxu1 %v3608_v58  ;;  %v3681_v58 = vld [vmem:[%s4914_s1 + $0x6dc] ss:$12 sps:$4 sm:$0xff]  }
  0xbb   : > { %2381 = vmatpush1.bf16.msra.mxu0 %v3604_v57  ;;  %3255 = vmatprep.subr.bf16.mxu1 %v3612_v60  ;;  %v287_v57 = vld [vmem:[%s4058_s27 + $0x58] sm:$0xff] }
  0xbc   : > { %2382 = vmatprep.subr.bf16.mxu0 %v3611_v59  ;;  %v3682_v59 = vld [vmem:[%s4914_s1 + $0x860] ss:$12 sps:$4 sm:$0xff]   ;;  %v4655_v60 = vpack.c.bf16 %v287_v57, %v287_v57 }
  0xbd   : > { %v3758_v57 = vld [vmem:[%s4914_s1 + $0x8d4] ss:$12 sps:$4 sm:$0xff]  }
  0xbe   : > { %3256 = vmatpush3.bf16.msra.mxu1 %v3613_v62  ;;  %v3683_v62 = vld [vmem:[%s4914_s1 + $0x7a0] ss:$12 sps:$4 sm:$0xff]  }
  0xbf   : > { %2383 = vmatpush1.bf16.msra.mxu0 %v3609_v61  ;;  %3257 = vmatprep.subr.bf16.mxu1 %v3617_v0  ;;  %v3679_v61 = vld [vmem:[%s4914_s1 + $0x6d8] ss:$12 sps:$4 sm:$0xff]  }
  0xc0   : > { %2384 = vmatprep.subr.bf16.mxu0 %v3616_v63  ;;  %v3686_v63 = vld [vmem:[%s4914_s1 + $0x6f4] ss:$12 sps:$4 sm:$0xff]   ;;  %v3687_v0 = vld [vmem:[%s4914_s1 + $0x878] ss:$12 sps:$4 sm:$0xff]  }
  0xc2   : > { %3258 = vmatpush3.bf16.msra.mxu1 %v3618_v2  ;;  %v3688_v2 = vld [vmem:[%s4914_s1 + $0x7b8] ss:$12 sps:$4 sm:$0xff]  }
  0xc3   : > { %2385 = vmatpush1.bf16.msra.mxu0 %v3614_v1  ;;  %3259 = vmatprep.subr.bf16.mxu1 %v3622_v4  ;;  %v3684_v1 = vld [vmem:[%s4914_s1 + $0x6f0] ss:$12 sps:$4 sm:$0xff]  }
  0xc4   : > { %2386 = vmatprep.subr.bf16.mxu0 %v3621_v3  ;;  %v3691_v3 = vld [vmem:[%s4914_s1 + $0x70c] ss:$12 sps:$4 sm:$0xff]   ;;  %v3692_v4 = vld [vmem:[%s4914_s1 + $0x890] ss:$12 sps:$4 sm:$0xff]  }
  0xc6   : > { %3260 = vmatpush3.bf16.msra.mxu1 %v3623_v6  ;;  %v3693_v6 = vld [vmem:[%s4914_s1 + $0x7d0] ss:$12 sps:$4 sm:$0xff]  }
  0xc7   : > { %2387 = vmatpush1.bf16.msra.mxu0 %v3619_v5  ;;  %3261 = vmatprep.subr.bf16.mxu1 %v3627_v8  ;;  %v3689_v5 = vld [vmem:[%s4914_s1 + $0x708] ss:$12 sps:$4 sm:$0xff]  }
  0xc8   : > { %2388 = vmatprep.subr.bf16.mxu0 %v3626_v7  ;;  %v3696_v7 = vld [vmem:[%s4914_s1 + $0x724] ss:$12 sps:$4 sm:$0xff]   ;;  %v3697_v8 = vld [vmem:[%s4914_s1 + $0x8a8] ss:$12 sps:$4 sm:$0xff]  }
  0xca   : > { %3262 = vmatpush3.bf16.msra.mxu1 %v3628_v10  ;;  %v3698_v10 = vld [vmem:[%s4914_s1 + $0x7e8] ss:$12 sps:$4 sm:$0xff]  }
  0xcb   : > { %2389 = vmatpush1.bf16.msra.mxu0 %v3624_v9  ;;  %3263 = vmatprep.subr.bf16.mxu1 %v3632_v13  ;;  %v3694_v9 = vld [vmem:[%s4914_s1 + $0x720] ss:$12 sps:$4 sm:$0xff]  }
  0xcc   : > { %2390 = vmatprep.subr.bf16.mxu0 %v3631_v12  ;;  %v3701_v12 = vld [vmem:[%s4914_s1 + $0x73c] ss:$12 sps:$4 sm:$0xff]   ;;  %v3702_v13 = vld [vmem:[%s4914_s1 + $0x8c0] ss:$12 sps:$4 sm:$0xff]  }
  0xce   : > { %3264 = vmatpush3.bf16.msra.mxu1 %v3633_v15  ;;  %v3703_v15 = vld [vmem:[%s4914_s1 + $0x800] ss:$12 sps:$4 sm:$0xff]  }
  0xcf   : > { %2391 = vmatpush1.bf16.msra.mxu0 %v3629_v14  ;;  %3271 = vmatprep.subr.bf16.mxu1 %v3637_v18  ;;  %v3699_v14 = vld [vmem:[%s4914_s1 + $0x738] ss:$12 sps:$4 sm:$0xff]   ;;  %v3704_v18 = vld [vmem:[%s4914_s1 + $0x750] ss:$12 sps:$4 sm:$0xff]  }
  0xd0   : > { %2401 = vmatprep.subr.bf16.mxu0 %v3636_v16  ;;  %v3706_v16 = vld [vmem:[%s4914_s1 + $0x754] ss:$12 sps:$4 sm:$0xff]  }
  0xd1   : > { %2636 = vmatmul.mubr.bf16.vlgmr.msra.gmra.mrb[16].mxu1 %v294_v20 }
  0xd2   : > { %2393 = vmatmul.mubr.bf16.vlgmr.msra.gmra.mrb[0].mxu0 %v294_v20  ;;  %3272 = vmatpush3.bf16.msra.mxu1 %v3638_v22  ;;  %v3711_v20 = vld [vmem:[%s4914_s1 + $0x76c] ss:$12 sps:$4 sm:$0xff]   ;;  %v3709_v22 = vld [vmem:[%s4914_s1 + $0x768] ss:$12 sps:$4 sm:$0xff]  }
  0xd3   : > { %2402 = vmatpush1.bf16.msra.mxu0 %v3634_v19  ;;  %3273 = vmatprep.subr.bf16.mxu1 %v3642_v23  ;;  %v3708_v19 = vld [vmem:[%s4914_s1 + $0x818] ss:$12 sps:$4 sm:$0xff]   ;;  %v286_v23 = vld [vmem:[%s4058_s27 + $0x50] sm:$0xff]  ;;  %s2798_s27 = scalar_lea.sflag [#allocation4], %s257_s18 }
  0xd4   : > { %2403 = vmatprep.subr.bf16.mxu0 %v3641_v11  ;;  %2675 = vmatprep.mubr.bf16.mxu1 %v297_v25  ;;  %v3713_v11 = vld [vmem:[%s4914_s1 + $0x830] ss:$12 sps:$4 sm:$0xff]  }
  0xd5   : > { %2433 = vmatprep.mubr.bf16.mxu0 %v297_v25  ;;  %v4741_v25 = vpack.c.bf16 %v286_v23, %v286_v23 }
  0xd6   : > { %3274 = vmatpush3.bf16.msra.mxu1 %v3643_v26  ;;  %v3714_v26 = vld [vmem:[%s4914_s1 + $0x780] ss:$12 sps:$4 sm:$0xff]  }
  0xd7   : > { %2404 = vmatpush1.bf16.msra.mxu0 %v3639_v24  ;;  %3275 = vmatprep.subr.bf16.mxu1 %v3647_v28  ;;  %v3716_v24 = vld [vmem:[%s4914_s1 + $0x784] ss:$12 sps:$4 sm:$0xff]  }
  0xd8   : > { %2405 = vmatprep.subr.bf16.mxu0 %v3646_v27  ;;  %v3719_v27 = vld [vmem:[%s4914_s1 + $0x79c] ss:$12 sps:$4 sm:$0xff]   ;;  %v3717_v28 = vld [vmem:[%s4914_s1 + $0x798] ss:$12 sps:$4 sm:$0xff]  }
  0xda   : > { %3276 = vmatpush3.bf16.msra.mxu1 %v3648_v30  ;;  %v3720_v30 = vld [vmem:[%s4914_s1 + $0x7b0] ss:$12 sps:$4 sm:$0xff]  }
  0xdb   : > { %2406 = vmatpush1.bf16.msra.mxu0 %v3644_v29  ;;  %3277 = vmatprep.subr.bf16.mxu1 %v3652_v32  ;;  %v3722_v29 = vld [vmem:[%s4914_s1 + $0x7b4] ss:$12 sps:$4 sm:$0xff]  }
  0xdc   : > { %2407 = vmatprep.subr.bf16.mxu0 %v3651_v31  ;;  %v3725_v31 = vld [vmem:[%s4914_s1 + $0x7cc] ss:$12 sps:$4 sm:$0xff]   ;;  %v3723_v32 = vld [vmem:[%s4914_s1 + $0x7c8] ss:$12 sps:$4 sm:$0xff]  }
  0xde   : > { %3278 = vmatpush3.bf16.msra.mxu1 %v3653_v34  ;;  %v3726_v34 = vld [vmem:[%s4914_s1 + $0x7e0] ss:$12 sps:$4 sm:$0xff]  }
  0xdf   : > { %2408 = vmatpush1.bf16.msra.mxu0 %v3649_v33  ;;  %3279 = vmatprep.subr.bf16.mxu1 %v3657_v36  ;;  %v3728_v33 = vld [vmem:[%s4914_s1 + $0x7e4] ss:$12 sps:$4 sm:$0xff]  }
  0xe0   : > { %2409 = vmatprep.subr.bf16.mxu0 %v3656_v35  ;;  %v3731_v35 = vld [vmem:[%s4914_s1 + $0x7fc] ss:$12 sps:$4 sm:$0xff]   ;;  %v3729_v36 = vld [vmem:[%s4914_s1 + $0x7f8] ss:$12 sps:$4 sm:$0xff]  }
  0xe2   : > { %3280 = vmatpush3.bf16.msra.mxu1 %v3658_v38 }
  0xe3   : > { %2410 = vmatpush1.bf16.msra.mxu0 %v3654_v37  ;;  %3281 = vmatprep.subr.bf16.mxu1 %v3662_v40  ;;  %v3734_v37 = vld [vmem:[%s4914_s1 + $0x814] ss:$12 sps:$4 sm:$0xff]   ;;  %v3732_v40 = vld [vmem:[%s4914_s1 + $0x810] ss:$12 sps:$4 sm:$0xff]  }
  0xe4   : > { %2411 = vmatprep.subr.bf16.mxu0 %v3661_v39 }
  0xe6   : > { %3282 = vmatpush3.bf16.msra.mxu1 %v3663_v42  ;;  %v3737_v42 = vld [vmem:[%s4914_s1 + $0x82c] ss:$12 sps:$4 sm:$0xff]  }
  0xe7   : > { %2412 = vmatpush1.bf16.msra.mxu0 %v3659_v41  ;;  %3283 = vmatprep.subr.bf16.mxu1 %v3667_v44  ;;  %v3735_v44 = vld [vmem:[%s4914_s1 + $0x828] ss:$12 sps:$4 sm:$0xff]  }
  0xe8   : > { %2413 = vmatprep.subr.bf16.mxu0 %v3666_v43 }
  0xea   : > { %3284 = vmatpush3.bf16.msra.mxu1 %v3668_v46  ;;  %v3738_v46 = vld [vmem:[%s4914_s1 + $0x840] ss:$12 sps:$4 sm:$0xff]  }
  0xeb   : > { %2414 = vmatpush1.bf16.msra.mxu0 %v3664_v45  ;;  %3285 = vmatprep.subr.bf16.mxu1 %v3672_v48  ;;  %v3740_v45 = vld [vmem:[%s4914_s1 + $0x844] ss:$12 sps:$4 sm:$0xff]  }
  0xec   : > { %2415 = vmatprep.subr.bf16.mxu0 %v3671_v47  ;;  %v3743_v47 = vld [vmem:[%s4914_s1 + $0x85c] ss:$12 sps:$4 sm:$0xff]   ;;  %v3741_v48 = vld [vmem:[%s4914_s1 + $0x858] ss:$12 sps:$4 sm:$0xff]  }
  0xee   : > { %3286 = vmatpush3.bf16.msra.mxu1 %v3673_v50  ;;  %v3744_v50 = vld [vmem:[%s4914_s1 + $0x870] ss:$12 sps:$4 sm:$0xff]  }
  0xef   : > { %2416 = vmatpush1.bf16.msra.mxu0 %v3669_v49  ;;  %3293 = vmatprep.subr.bf16.mxu1 %v3677_v54  ;;  %v3746_v49 = vld [vmem:[%s4914_s1 + $0x874] ss:$12 sps:$4 sm:$0xff]   ;;  %v3752_v54 = vld [vmem:[%s4914_s1 + $0x8a4] ss:$12 sps:$4 sm:$0xff]  }
  0xf0   : > { %2417 = vmatprep.subr.bf16.mxu0 %v3676_v51  ;;  %v3749_v51 = vld [vmem:[%s4914_s1 + $0x88c] ss:$12 sps:$4 sm:$0xff]  }
  0xf1   : > { %2676 = vmatmul.mubr.bf16.vlgmr.msra.gmra.mrb[20].mxu1 %v4643_v56 }
  0xf2   : > { %3294 = vmatpush3.bf16.msra.mxu1 %v3678_v52  ;;  %2715 = vmatprep.mubr.bf16.mxu1 %v4655_v60  ;;  %v3753_v52 = vld [vmem:[%s4914_s1 + $0x8b8] ss:$12 sps:$4 sm:$0xff]  }
  0xf3   : > { %2418 = vmatpush1.bf16.msra.mxu0 %v3674_v55  ;;  %3295 = vmatprep.subr.bf16.mxu1 %v3682_v59  ;;  %v3750_v55 = vld [vmem:[%s4914_s1 + $0x8a0] ss:$12 sps:$4 sm:$0xff]  }
  0xf4   : > { %2419 = vmatprep.subr.bf16.mxu0 %v3681_v58 }
  0xf6   : > { %3296 = vmatpush3.bf16.msra.mxu1 %v3683_v62 }
  0xf7   : > { %2420 = vmatpush1.bf16.msra.mxu0 %v3679_v61  ;;  %3297 = vmatprep.subr.bf16.mxu1 %v3687_v0 }
  0xf8   : > { %2421 = vmatprep.subr.bf16.mxu0 %v3686_v63  ;;  %v3761_v63 = vld [vmem:[%s4914_s1 + $0x8ec] ss:$12 sps:$4 sm:$0xff]  }
  0xfa   : > { %3298 = vmatpush3.bf16.msra.mxu1 %v3688_v2  ;;  %v271_v2 = vlaneseq }
  0xfb   : > { %2422 = vmatpush1.bf16.msra.mxu0 %v3684_v1  ;;  %3299 = vmatprep.subr.bf16.mxu1 %v3692_v4  ;;  %v3759_v1 = vld [vmem:[%s4914_s1 + $0x8e8] ss:$12 sps:$4 sm:$0xff]  }
  0xfc   : > { %2423 = vmatprep.subr.bf16.mxu0 %v3691_v3  ;;  %v4844_v3 = vshrl.u32 %v271_v2, 7 }
  0xfe   : > { %3300 = vmatpush3.bf16.msra.mxu1 %v3693_v6  ;;  %v696_v4 = vsub.s32 2, %v4844_v3 }
  0xff   : > { %2424 = vmatpush1.bf16.msra.mxu0 %v3689_v5  ;;  %3301 = vmatprep.subr.bf16.mxu1 %v3697_v8  ;;  %v684_v5 = vld [vmem:[%s4915_s2] sm:$0x7] }
 0x100   : > { %2425 = vmatprep.subr.bf16.mxu0 %v3696_v7  ;;  %v697_v6 = vrot.slane %v684_v5, %v696_v4 }
 0x102   : > { %3302 = vmatpush3.bf16.msra.mxu1 %v3698_v10 }
 0x103   : > { %2426 = vmatpush1.bf16.msra.mxu0 %v3694_v9  ;;  %3303 = vmatprep.subr.bf16.mxu1 %v3702_v13 }
 0x104   : > { %2427 = vmatprep.subr.bf16.mxu0 %v3701_v12 }
 0x106   : > { %3304 = vmatpush3.bf16.msra.mxu1 %v3703_v15 }
 0x107   : > { %2428 = vmatpush1.bf16.msra.mxu0 %v3699_v14  ;;  %3305 = vmatprep.subr.bf16.mxu1 %v3707_v17 }
 0x108   : > { %2429 = vmatprep.subr.bf16.mxu0 %v3706_v16 }
 0x10a   : > { %3306 = vmatpush3.bf16.msra.mxu1 %v3708_v19 }
 0x10b   : > { %2430 = vmatpush1.bf16.msra.mxu0 %v3704_v18  ;;  %3307 = vmatprep.subr.bf16.mxu1 %v3712_v21 }
 0x10c   : > { %2431 = vmatprep.subr.bf16.mxu0 %v3711_v20 }
 0x10e   : > { %3308 = vmatpush3.bf16.msra.mxu1 %v3713_v11 }
 0x10f   : > { %2432 = vmatpush1.bf16.msra.mxu0 %v3709_v22 }
 0x110   : > { %2442 = vmatprep.subr.bf16.mxu0 %v3716_v24 }
 0x111   : > { %2716 = vmatmul.mubr.bf16.vlgmr.msra.gmra.mrb[24].mxu1 %v4741_v25 }
 0x112   : > { %2434 = vmatmul.mubr.bf16.vlgmr.msra.gmra.mrb[0].mxu0 %v4643_v56  ;;  %v3755_v56 = vld [vmem:[%s4914_s1 + $0x8bc] ss:$12 sps:$4 sm:$0xff]  }
 0x113   : > { %2443 = vmatpush1.bf16.msra.mxu0 %v3714_v26  ;;  %2474 = vmatprep.mubr.bf16.mxu0 %v4655_v60  ;;  %v3756_v60 = vld [vmem:[%s4914_s1 + $0x8d0] ss:$12 sps:$4 sm:$0xff]  }
 0x114   : > { %2444 = vmatprep.subr.bf16.mxu0 %v3719_v27 }
 0x117   : > { %2445 = vmatpush1.bf16.msra.mxu0 %v3717_v28 }
 0x118   : > { %2446 = vmatprep.subr.bf16.mxu0 %v3722_v29 }
 0x11b   : > { %2447 = vmatpush1.bf16.msra.mxu0 %v3720_v30 }
 0x11c   : > { %2448 = vmatprep.subr.bf16.mxu0 %v3725_v31 }
 0x11f   : > { %2449 = vmatpush1.bf16.msra.mxu0 %v3723_v32 }
 0x120   : > { %2450 = vmatprep.subr.bf16.mxu0 %v3728_v33 }
 0x123   : > { %2451 = vmatpush1.bf16.msra.mxu0 %v3726_v34 }
 0x124   : > { %2452 = vmatprep.subr.bf16.mxu0 %v3731_v35  ;;  %v4782_v38 = vpop.f32.mrb[0].mxu1 }
 0x125   : > { %v4784_v39 = vpop.f32.mrb[1].mxu1 }
 0x126   : > { %v2275_v41 = vpop.f32.mrb[2].mxu1 }
 0x127   : > { %2453 = vmatpush1.bf16.msra.mxu0 %v3729_v36  ;;  %v2276_v43 = vpop.f32.mrb[3].mxu1  ;;  %v692_v41 = vsub.s32 1, %v4844_v3 }
 0x128   : > { %2454 = vmatprep.subr.bf16.mxu0 %v3734_v37 }
 0x129   : > { %v693_v43 = vrot.slane %v684_v5, %v692_v41 }
 0x12b   : > { %2455 = vmatpush1.bf16.msra.mxu0 %v3732_v40  ;;  %v688_v40 = vsub.s32 0, %v4844_v3 }
 0x12c   : > { %2456 = vmatprep.subr.bf16.mxu0 %v3737_v42 }
 0x12d   : > { %v689_v42 = vrot.slane %v684_v5, %v688_v40 }
 0x12f   : > { %2457 = vmatpush1.bf16.msra.mxu0 %v3735_v44  ;;  %v2726_v44 = vld [vmem:[%s4916_s3] sm:$0x7] }
 0x130   : > { %2458 = vmatprep.subr.bf16.mxu0 %v3740_v45  ;;  %v2272_v45 = vadd.f32 %v4782_v38, %v689_v42 }
 0x133   : > { %2459 = vmatpush1.bf16.msra.mxu0 %v3738_v46  ;;  %v2274_v46 = vadd.f32 %v4784_v39, %v693_v43 }
 0x134   : > { %2460 = vmatprep.subr.bf16.mxu0 %v3743_v47 }
 0x137   : > { %2461 = vmatpush1.bf16.msra.mxu0 %v3741_v48 }
 0x138   : > { %2462 = vmatprep.subr.bf16.mxu0 %v3746_v49 }
 0x13b   : > { %2463 = vmatpush1.bf16.msra.mxu0 %v3744_v50  ;;  %v2731_v50 = vrot.slane %v2726_v44, %v688_v40 }
 0x13c   : > { %2464 = vmatprep.subr.bf16.mxu0 %v3749_v51 }
 0x13f   : > { %2465 = vmatpush1.bf16.msra.mxu0 %v3747_v53  ;;  %v2739_v53 = vrot.slane %v2726_v44, %v696_v4 }
 0x140   : > { %2466 = vmatprep.subr.bf16.mxu0 %v3752_v54 }
 0x143   : > { %2467 = vmatpush1.bf16.msra.mxu0 %v3750_v55  ;;  %v2735_v55 = vrot.slane %v2726_v44, %v692_v41 }
 0x144   : > { %2468 = vmatprep.subr.bf16.mxu0 %v3755_v56  ;;  %v3199_v58 = vpop.f32.mrb[4].mxu1 }
 0x145   : > { %v3200_v59 = vpop.f32.mrb[5].mxu1 }
 0x146   : > { %v3201_v61 = vadd.f32 %v3200_v59, %v3199_v58  ;;  %v3202_v62 = vpop.f32.mrb[6].mxu1 }
 0x147   : > { %2469 = vmatpush1.bf16.msra.mxu0 %v3753_v52  ;;  %v3203_v0 = vpop.f32.mrb[7].mxu1 }
 0x148   : > { %2470 = vmatprep.subr.bf16.mxu0 %v3758_v57  ;;  %v2518_v7 = vadd.f32 %v3201_v61, %v697_v6 }
 0x14b   : > { %2471 = vmatpush1.bf16.msra.mxu0 %v3756_v60 }
 0x14c   : > { %2472 = vmatprep.subr.bf16.mxu0 %v3761_v63  ;;  %v273_v63 = vstv %s2889_s20  ;;  %s3770_s20 = sshll.u32 %s3831_s4, 4  ;;  %s3771_s20 = int_to_ptr.vmem [resolvable:$false] %s3770_s20 }
 0x14d   : > { %v274_v0 = vadd.s32 %v273_v63, %v4844_v3  ;;  %s3772_s21 = scalar_lea.vmem %s3771_s20, 256  ;;  %p3773_p0 = scmp.lt.s32.totalorder %s4868_s30, %s3771_s20 }
 0x14e   : > { %p3774_p1 = scmp.lt.s32.totalorder %s3772_s21, %s3766_s19 }
 0x14f   : > { %2473 = vmatpush1.bf16.msra.mxu0 %v3759_v1  ;;  %v3178_v1 = vld [vmem:[#allocation2] ss:$0 sm:$0xff]  ;;  %vm275_vm1 = vcmp.lt.s32.totalorder %v274_v0, 20 }
 0x150   : > { %p3775_p2 = por %p3774_p1, %p3773_p0 }
 0x152   : > { %2475 = vmatmul.mubr.bf16.vlgmr.msra.gmra.mrb[0].mxu0 %v4741_v25  ;;  %p3776_p3 = pnand %p3775_p2, %p3769_p13 }
 0x164   : > { %v3221_v8 = vpop.f32.mrb[8].mxu1 }
 0x165   : > { %v3222_v9 = vpop.f32.mrb[9].mxu1 }
 0x166   : > { %v3223_v10 = vadd.f32 %v3222_v9, %v3221_v8  ;;  %v3224_v12 = vpop.f32.mrb[10].mxu1 }
 0x167   : > { %v3225_v13 = vpop.f32.mrb[11].mxu1  ;;  %v2761_v12 = vld [vmem:[%s268_s10] sm:$0xff] }
 0x168   : > { %v2558_v14 = vadd.f32 %v3223_v10, %v2518_v7  ;;  %v2762_v13 = vsel %vm275_vm1, %v2761_v12, 0.0 }
 0x169   : > { %vm2780_vm2 = vcmp.gt.f32.partialorder %v2762_v13, 0.0 }
 0x184   : > { %v3243_v15 = vpop.f32.mrb[12].mxu1 }
 0x185   : > { %v3244_v16 = vpop.f32.mrb[13].mxu1 }
 0x186   : > { %v3245_v17 = vadd.f32 %v3244_v16, %v3243_v15  ;;  %v3246_v18 = vpop.f32.mrb[14].mxu1 }
 0x187   : > { %v3247_v19 = vpop.f32.mrb[15].mxu1 }
 0x188   : > { %v2598_v20 = vadd.f32 %v3245_v17, %v2558_v14  ;;  %v3830_v19 = vmov 0.25  }
 0x1a4   : > { %v3265_v21 = vpop.f32.mrb[16].mxu1 }
 0x1a5   : > { %v3266_v22 = vpop.f32.mrb[17].mxu1 }
 0x1a6   : > { %v3267_v11 = vadd.f32 %v3266_v22, %v3265_v21  ;;  %v3268_v23 = vpop.f32.mrb[18].mxu1 }
 0x1a7   : > { %v3269_v24 = vpop.f32.mrb[19].mxu1 }
 0x1a8   : > { %v2638_v25 = vadd.f32 %v3267_v11, %v2598_v20  ;;  %v2781_v20 = vsel %vm2780_vm2, 1.0, %v3830_v19 }
 0x1a9   : > { %v2782_v24 = vsel %vm275_vm1, %v2781_v20, 0.0 }
 0x1c4   : > { %v3287_v26 = vpop.f32.mrb[20].mxu1 }
 0x1c5   : > { %v3288_v27 = vpop.f32.mrb[21].mxu1 }
 0x1c6   : > { %v3289_v28 = vadd.f32 %v3288_v27, %v3287_v26  ;;  %v3290_v29 = vpop.f32.mrb[22].mxu1 }
 0x1c7   : > { %v3291_v30 = vpop.f32.mrb[23].mxu1 }
 0x1c8   : > { %v2678_v31 = vadd.f32 %v3289_v28, %v2638_v25 }
 0x1e4   : > { %v3309_v32 = vpop.f32.mrb[24].mxu1 }
 0x1e5   : > { %v3310_v33 = vpop.f32.mrb[25].mxu1 }
 0x1e6   : > { %v3311_v34 = vadd.f32 %v3310_v33, %v3309_v32  ;;  %v3312_v35 = vpop.f32.mrb[26].mxu1 }
 0x1e7   : > { %v3313_v36 = vpop.f32.mrb[27].mxu1 }
 0x1e8   : > { %v2718_v37 = vadd.f32 %v3311_v34, %v2678_v31 }
 0x1ea   : > { %v2725_v48 = vmax.f32 %v2718_v37, 0.0 }
 0x1ec   : > { %v2745_v60 = vmul.f32 %v2739_v53, %v2725_v48 }
 0x1ee   : > { %v2748_v39 = vsel %vm2747_vm0, %v2745_v60, 0.0 }
 0x225   : > { %v2476_v47 = vpop.f32.mrb[0].mxu0 }
 0x226   : > { %v3316_v49 = vadd.f32 %v2476_v47, %v2272_v45  ;;  %v2478_v51 = vpop.f32.mrb[1].mxu0 }
 0x227   : > { %v3318_v54 = vadd.f32 %v2478_v51, %v2274_v46  ;;  %v2480_v56 = vpop.f32.mrb[2].mxu0 }
 0x228   : > { %v2723_v52 = vmax.f32 %v3316_v49, 0.0  ;;  %v2481_v57 = vpop.f32.mrb[3].mxu0 }
 0x229   : > { %v2724_v58 = vmax.f32 %v3318_v54, 0.0 }
 0x22a   : > { %v2743_v59 = vmul.f32 %v2731_v50, %v2723_v52 }
 0x22b   : > { %v2744_v61 = vmul.f32 %v2735_v55, %v2724_v58 }
 0x22d   : > { %v2746_v38 = vadd.f32 %v2744_v61, %v2743_v59 }
 0x22f   : > { %v2749_v62 = vadd.f32 %v2748_v39, %v2746_v38 }
 0x231   : > { %2750 = vadd.xlane.f32.xlu0 %v2749_v62 }
 0x2be   : > { %v2751_v2 = vpop.xlane.xlu0 %2750 }
 0x2bf   : > { %v2759_v4 = vadd.f32 %v3178_v1, %v2751_v2 }
 0x2c1   : > { %v2760_v5 = vsel %vm275_vm1, %v2759_v4, 0.0 }
 0x2c2   : > { %v2766_v6 = vand.u32 2147483647, %v2760_v5  ;;  %v2763_v15 = vmax.f32 %v2760_v5, 0.0  ;;  %v2764_v16 = vmul.f32 %v2762_v13, %v2760_v5 }
 0x2c4   : > { %v2767_v7 = vsub.f32 0.0, %v2766_v6  ;;  %v2765_v11 = vsub.f32 %v2763_v15, %v2764_v16 }
 0x2c6   : > { %v2768_v8 = vmul.f32 1.442695, %v2767_v7 }
 0x2c8   : > { %3762 = vpow2.f32 %v2768_v8 }
 0x2d2   : > { %v3763_v9 = vpop.eup %3762 }
 0x2d3   : > { %v2770_v10 = vadd.f32 1.0, %v3763_v9  ;;  %v2773_v3 = vmul.f32 -0.5, %v3763_v9  ;;  %v2776_v17 = vand.u32 2147483647, %v3763_v9 }
 0x2d5   : > { %3764 = vlog2.f32 %v2770_v10  ;;  %v2774_v14 = vadd.f32 1.0, %v2773_v3  ;;  %vm2777_vm3 = vcmp.lt.f32.partialorder %v2776_v17, 0.0004427343 }
 0x2d7   : > { %v2775_v22 = vmul.f32 %v3763_v9, %v2774_v14 }
 0x2df   : > { %v3765_v18 = vpop.eup %3764 }
 0x2e0   : > { %v2772_v21 = vmul.f32 0.6931472, %v3765_v18 }
 0x2e2   : > { %v2778_v23 = vsel %vm2777_vm3, %v2775_v22, %v2772_v21 }
 0x2e3   : > { %v2779_v25 = vadd.f32 %v2778_v23, %v2765_v11 }
 0x2e5   : > { %v2783_v26 = vmul.f32 %v2782_v24, %v2779_v25 }
 0x2e7   : > { %v2785_v27 = vsel %vm2784_vm4, %v2783_v26, 0.0 }
 0x2e8   : > { %2786 = vadd.xlane.f32.xlu0 %v2785_v27 }
 0x375   : > { %v2787_v28 = vpop.xlane.xlu0 %2786 }
 0x376   : > { %v2788_v29 = vrot.slane %v2787_v28, 4 }
 0x378   : > { %v2789_v30 = vadd.f32 %v2788_v29, %v2787_v28 }
 0x37a   : > { %v2790_v31 = vrot.slane %v2789_v30, 2 }
 0x37c   : > { %v2791_v32 = vadd.f32 %v2790_v31, %v2789_v30 }
 0x37e   : > { %v2792_v33 = vrot.slane %v2791_v32, 1 }
 0x380   : > { %v2793_v34 = vadd.f32 %v2792_v33, %v2791_v32 }
 0x382   : > { %3336 = vpush %v2793_v34 }
 0x3b3   : > { %s3337_s14 = spop %3336 }
 0x3b4   : > { %v2795_v35 = vstv %s3337_s14 }
 0x3b5   : > { %2796 = vst [vmem:[%s259_s12] sm:$0xff] %v2795_v35 }
 0x3b6   : > { %3779 = shalt.err (!%p3776_p3)
}
 0x3b7   : > { %s3780_s22 = scalar_lea.hbm %s4873_s17, 128  ;;  %s3784_s18 = scalar_lea.hbm %s4919_s6, 384 }
 0x3b8   : > { %p3781_p4 = scmp.ne.s32.totalorder %s4873_s17, %s3780_s22  ;;  %p3785_p9 = scmp.lt.u32.totalorder %s4873_s17, %s4919_s6 }
 0x3b9   : > { %p3786_p10 = scmp.lt.u32.totalorder %s3784_s18, %s3780_s22  ;;  %p3788_p12 = scmp.lt.u32.totalorder %s3780_s22, %s4873_s17 }
 0x3ba   : > { %p3782_p7 = pnand %p3781_p4, %p3908_p5 }
 0x3bb   : > { %p3787_p11 = por %p3786_p10, %p3785_p9 }
 0x3bc   : > { %p3783_p8 = pneg %p3782_p7 }
 0x3bd   : > { %p3789_p13 = por %p3788_p12, %p3787_p11 }
 0x3bf   : > { %p3790_p0 = pnand %p3789_p13, %p3783_p8 }
 0x3c1   : > { %3793 = shalt.err (!%p3790_p0)
}
 0x3c2   : > { %3338 = dma.vmem_to_hbm [thread:$0]  (%p3908_p5), %s4868_s30, 128, %s4873_s17, %s2798_s27  }
 0x3c3 PF: > { %p3344_p1 = scmp.ge.s32.totalorder %s3828_s26, 2  ;;  %s2823_s13 = sand.u32 1, %s3816_s23  }
 0x3c4   : > { %s2824_s14 = scalar_lea.sflag [#allocation4], %s2823_s13 }
 0x3c5   : > { %p3341_p2 = pnand %p3344_p1, %p3912_p6 }
 0x3c7   : > { %3811 = dma.done.wait (!%p3341_p2), %s2824_s14, 128  }
 0x3c8   : > { %3813 = vsyncadd (!%p3341_p2), %s2824_s14, 4294967168  ;;  %p18_p3 = scmp.ge.s32.totalorder %s3895_s28, 5   ;;  %s4922_s23 = smov %s3820_s24 }
 0x3c9   : > { %s4923_s24 = smov %s3824_s25  ;;  %s4924_s25 = smov %s3906_s7 }
 0x3ca   : > { %s4925_s26 = smov %s3895_s28  ;;  %20 = sbr.rel (!%p18_p3) target bundleno = 6 (0x6), region = 82 }
 0x3d1   :  { %2829 = vsyncpa [#allocation4], 1 }
 0x3d2   :  { %2831 = vsyncpa [#allocation4 + $0x1], 1 }

</bundles_post_ra>
